<compile_context>
chip_gen: v6e
topology: v6e:2x2x1
jax: 0.10.0
libtpu: 0.0.40
codegen_flags: <defaults>
</compile_context>

<pallas_src>
import functools

import jax
import jax.numpy as jnp
from jax.experimental import pallas as pl
from jax.experimental.pallas import tpu as pltpu

# ----------------------------- configuration --------------------------------
H = 768            # config.hidden_size (hard-coded 768 inside the torch head)
H2 = 2 * H
HALF = H // 2      # 384 per-direction hidden for GRU1 / LSTM1
G1 = 3 * HALF      # GRU1 gate width
G2 = 4 * HALF      # LSTM gate width
VOCAB = 60
AST_VOCAB = 44     # nn.Embedding(44, 768)
CODE_LEN = 10      # args.code_length
DF_LEN = 2         # args.data_flow_length
SNIPPETS = 1       # args.code_snippets
SEQ = (CODE_LEN + DF_LEN) * SNIPPETS   # 12
BATCH = 2
EPS_BN = 1e-5

# fixed padding buckets -> a handful of Mosaic compiles regardless of raggedness
T_PAD = 8    # max tokens per AST path
S_PAD = 8    # max paths per subtree
K_PAD = 8    # max subtrees per sample
# 128-row blocks: fills the MXU (vs 3-6% utilization at 8 rows) and cuts grid
# step count 16x; capped at 128 (not 256) so v7x's 64 MiB VMEM still fits.
PB = 128     # paths per grid block
SB = 128     # subtrees per grid block
BB = 128     # samples per grid block


def _compute_vmem_limit():
    # leave ~25% headroom (v7x has only 64 MiB physical VMEM per TensorCore)
    try:
        cap = int(pltpu.get_tpu_info().vmem_capacity_bytes)
    except Exception:
        cap = 64 << 20
    return max(32 << 20, min((cap * 3) // 4, 96 << 20))


_VMEM_LIMIT = _compute_vmem_limit()


def _cparams(n_par):
    return pltpu.CompilerParams(
        dimension_semantics=("parallel",) * n_par,
        vmem_limit_bytes=_VMEM_LIMIT)


def _probe_buffered_one():
    """Feature-test pipeline_mode=pl.Buffered(1) for single-buffered constant
    weights; fall back to default double-buffering if unsupported."""
    try:
        def _k(x_ref, o_ref):
            o_ref[...] = x_ref[...] + 1.0
        f = pl.pallas_call(
            _k, grid=(2,),
            in_specs=[pl.BlockSpec((8, 128), lambda i: (0, 0),
                                   pipeline_mode=pl.Buffered(1))],
            out_specs=pl.BlockSpec((8, 128), lambda i: (i, 0)),
            out_shape=jax.ShapeDtypeStruct((16, 128), jnp.float32))
        r = f(jnp.ones((8, 128), jnp.float32))
        return bool(jnp.all(r == 2.0))
    except Exception:
        return False


_BUF1 = _probe_buffered_one()


def _const_spec(shape):
    """BlockSpec for a grid-invariant operand (weight / bias / table): fetched
    once, single-buffered when the backend supports Buffered(1)."""
    idx = lambda *_: (0,) * len(shape)
    if _BUF1:
        return pl.BlockSpec(shape, idx, pipeline_mode=pl.Buffered(1))
    return pl.BlockSpec(shape, idx)


# ---------------- kernel 1: encoder stand-in dense (lane-dense rows) ----------
def _encoder_dense_kernel(x_ref, w_ref, b_ref, o_ref):
    # TODO(synk): the real encoder is an external pretrained RoBERTa; a single
    # tanh dense layer stands in for last_hidden_state.
    o_ref[...] = jnp.tanh(
        jnp.dot(x_ref[...].astype(jnp.bfloat16), w_ref[...],
                preferred_element_type=jnp.float32) + b_ref[...])


@functools.lru_cache(maxsize=None)
def _encoder_call(rows):
    return jax.jit(pl.pallas_call(
        _encoder_dense_kernel,
        grid=(1,),
        in_specs=[pl.BlockSpec((rows, H), lambda i: (0, 0)),
                  _const_spec((H, H)),
                  _const_spec((1, H))],
        out_specs=pl.BlockSpec((rows, H), lambda i: (0, 0)),
        out_shape=jax.ShapeDtypeStruct((rows, H), jnp.float32),
        compiler_params=_cparams(1),
    ))


# ------ kernel 2: batched path GRU (768->768) fused with the `tree` linear ----
# PyTorch gate order (r, z, n);  h_t = (1-z)*n + z*h_{t-1}.
# Input projection == one-hot(token) @ (emb44 @ W_ih) with the table pre-folded
# host-side; the projection result is kept in VMEM scratch (gx_ref).
def _path_gru_kernel(oh_ref, len_ref, ft_ref, tbl_ref, bx_ref, wh_ref, bhn_ref,
                     tw_ref, tb_ref, out_ref, gx_ref):
    oh = oh_ref[...].reshape(T_PAD * PB, AST_VOCAB).astype(jnp.bfloat16)
    gx_ref[...] = jnp.dot(oh, tbl_ref[...],
                          preferred_element_type=jnp.float32) + bx_ref[...]
    lens = len_ref[...]                                    # (PB, 1) f32
    h = jnp.zeros((PB, H), jnp.float32)
    for t in range(T_PAD):                                 # static unroll (small T)
        gxt = gx_ref[pl.ds(t * PB, PB), :]
        gh = jnp.dot(h.astype(jnp.bfloat16), wh_ref[...],
                     preferred_element_type=jnp.float32)
        r = jax.nn.sigmoid(gxt[:, :H] + gh[:, :H])
        z = jax.nn.sigmoid(gxt[:, H:2 * H] + gh[:, H:2 * H])
        n = jnp.tanh(gxt[:, 2 * H:] + r * (gh[:, 2 * H:] + bhn_ref[...]))
        # hold h past the end of each (ragged) path
        h = jnp.where(lens > float(t), (1.0 - z) * n + z * h, h)
    tree = jnp.dot(ft_ref[...].astype(jnp.bfloat16), tw_ref[...],
                   preferred_element_type=jnp.float32) + tb_ref[...]
    out_ref[...] = (tree + h).astype(out_ref.dtype)        # leaf vectors (bf16)


@functools.lru_cache(maxsize=None)
def _path_gru_call(p_pad):
    G = 3 * H
    return jax.jit(pl.pallas_call(
        _path_gru_kernel,
        grid=(p_pad // PB,),
        in_specs=[
            pl.BlockSpec((T_PAD, PB, AST_VOCAB), lambda b: (0, b, 0)),  # one-hot tokens
            pl.BlockSpec((PB, 1), lambda b: (b, 0)),                    # path lengths
            pl.BlockSpec((PB, H), lambda b: (b, 0)),                    # gathered feature_s rows
            _const_spec((AST_VOCAB, G)),   # emb44 @ W_ih  (bf16)
            _const_spec((1, G)),           # combined GRU bias (b_ir+b_hr, b_iz+b_hz, b_in)
            _const_spec((H, G)),           # GRU W_hh (bf16)
            _const_spec((1, H)),           # b_hn
            _const_spec((H, H)),           # tree W (bf16)
            _const_spec((1, H)),           # tree b
        ],
        out_specs=pl.BlockSpec((PB, H), lambda b: (b, 0)),
        out_shape=jax.ShapeDtypeStruct((p_pad, H), jnp.bfloat16),
        scratch_shapes=[pltpu.VMEM((T_PAD * PB, G), jnp.float32)],      # hoisted gx
        compiler_params=_cparams(1),
    ))


# --- kernel 3: fused bidirectional GRU1 (768 -> 2x384) + max-over-time + relu --
def _bi_gru_kernel(xf_ref, xb_ref, len_ref, wxf_ref, wxb_ref, whf_ref, whb_ref,
                   bxf_ref, bxb_ref, bhnf_ref, bhnb_ref, out_ref,
                   gxf_ref, gxb_ref):
    gxf_ref[...] = jnp.dot(xf_ref[...].reshape(S_PAD * SB, H), wxf_ref[...],
                           preferred_element_type=jnp.float32) + bxf_ref[...]
    gxb_ref[...] = jnp.dot(xb_ref[...].reshape(S_PAD * SB, H), wxb_ref[...],
                           preferred_element_type=jnp.float32) + bxb_ref[...]
    lens = len_ref[...]
    hf = jnp.zeros((SB, HALF), jnp.float32)
    hb = jnp.zeros((SB, HALF), jnp.float32)
    # running max over held outputs; zero-init is exact because of the final relu
    mxf = jnp.zeros((SB, HALF), jnp.float32)
    mxb = jnp.zeros((SB, HALF), jnp.float32)
    for t in range(S_PAD):
        live = lens > float(t)
        gt = gxf_ref[pl.ds(t * SB, SB), :]
        gh = jnp.dot(hf.astype(jnp.bfloat16), whf_ref[...],
                     preferred_element_type=jnp.float32)
        r = jax.nn.sigmoid(gt[:, :HALF] + gh[:, :HALF])
        z = jax.nn.sigmoid(gt[:, HALF:2 * HALF] + gh[:, HALF:2 * HALF])
        n = jnp.tanh(gt[:, 2 * HALF:] + r * (gh[:, 2 * HALF:] + bhnf_ref[...]))
        hf = jnp.where(live, (1.0 - z) * n + z * hf, hf)
        gt = gxb_ref[pl.ds(t * SB, SB), :]
        gh = jnp.dot(hb.astype(jnp.bfloat16), whb_ref[...],
                     preferred_element_type=jnp.float32)
        r = jax.nn.sigmoid(gt[:, :HALF] + gh[:, :HALF])
        z = jax.nn.sigmoid(gt[:, HALF:2 * HALF] + gh[:, HALF:2 * HALF])
        n = jnp.tanh(gt[:, 2 * HALF:] + r * (gh[:, 2 * HALF:] + bhnb_ref[...]))
        hb = jnp.where(live, (1.0 - z) * n + z * hb, hb)
        mxf = jnp.maximum(mxf, hf)
        mxb = jnp.maximum(mxb, hb)
    out_ref[...] = jnp.maximum(
        jnp.concatenate([mxf, mxb], axis=1), 0.0).astype(out_ref.dtype)


@functools.lru_cache(maxsize=None)
def _bi_gru_call(ns_pad):
    return jax.jit(pl.pallas_call(
        _bi_gru_kernel,
        grid=(ns_pad // SB,),
        in_specs=[
            pl.BlockSpec((S_PAD, SB, H), lambda b: (0, b, 0)),  # leafs, forward order (bf16)
            pl.BlockSpec((S_PAD, SB, H), lambda b: (0, b, 0)),  # leafs, reversed order (bf16)
            pl.BlockSpec((SB, 1), lambda b: (b, 0)),            # paths per subtree
            _const_spec((H, G1)), _const_spec((H, G1)),         # W_ih fwd/bwd
            _const_spec((HALF, G1)), _const_spec((HALF, G1)),   # W_hh fwd/bwd
            _const_spec((1, G1)), _const_spec((1, G1)),         # combined r/z/n input biases
            _const_spec((1, HALF)), _const_spec((1, HALF)),     # b_hn fwd/bwd
        ],
        out_specs=pl.BlockSpec((SB, H), lambda b: (b, 0)),
        out_shape=jax.ShapeDtypeStruct((ns_pad, H), jnp.bfloat16),
        scratch_shapes=[pltpu.VMEM((S_PAD * SB, G1), jnp.float32),
                        pltpu.VMEM((S_PAD * SB, G1), jnp.float32)],
        compiler_params=_cparams(1),
    ))


# ---- kernel 4: fused bidirectional LSTM + max-over-time + classification head ----
# PyTorch gate order (i, f, g, o); eval BatchNorm folded into w1/b1, w2/b2;
# dropout = identity (eval).
def _lstm_head_kernel(xf_ref, xb_ref, len_ref, wxf_ref, wxb_ref, whf_ref,
                      whb_ref, bf_ref, bb_ref, w1_ref, b1_ref, w2_ref, b2_ref,
                      wo_ref, bo_ref, out_ref, gxf_ref, gxb_ref):
    gxf_ref[...] = jnp.dot(xf_ref[...].reshape(K_PAD * BB, H), wxf_ref[...],
                           preferred_element_type=jnp.float32) + bf_ref[...]
    gxb_ref[...] = jnp.dot(xb_ref[...].reshape(K_PAD * BB, H), wxb_ref[...],
                           preferred_element_type=jnp.float32) + bb_ref[...]
    lens = len_ref[...]
    hf = jnp.zeros((BB, HALF), jnp.float32)
    cf = jnp.zeros((BB, HALF), jnp.float32)
    hb = jnp.zeros((BB, HALF), jnp.float32)
    cb = jnp.zeros((BB, HALF), jnp.float32)
    mxf = jnp.full((BB, HALF), -1e30, jnp.float32)
    mxb = jnp.full((BB, HALF), -1e30, jnp.float32)
    for t in range(K_PAD):
        live = lens > float(t)
        # forward direction
        g = gxf_ref[pl.ds(t * BB, BB), :] + jnp.dot(
            hf.astype(jnp.bfloat16), whf_ref[...], preferred_element_type=jnp.float32)
        i_g = jax.nn.sigmoid(g[:, :HALF])
        f_g = jax.nn.sigmoid(g[:, HALF:2 * HALF])
        g_g = jnp.tanh(g[:, 2 * HALF:3 * HALF])
        o_g = jax.nn.sigmoid(g[:, 3 * HALF:])
        c_new = f_g * cf + i_g * g_g
        cf = jnp.where(live, c_new, cf)
        hf = jnp.where(live, o_g * jnp.tanh(c_new), hf)
        # backward direction (pre-reversed input)
        g = gxb_ref[pl.ds(t * BB, BB), :] + jnp.dot(
            hb.astype(jnp.bfloat16), whb_ref[...], preferred_element_type=jnp.float32)
        i_g = jax.nn.sigmoid(g[:, :HALF])
        f_g = jax.nn.sigmoid(g[:, HALF:2 * HALF])
        g_g = jnp.tanh(g[:, 2 * HALF:3 * HALF])
        o_g = jax.nn.sigmoid(g[:, 3 * HALF:])
        c_new = f_g * cb + i_g * g_g
        cb = jnp.where(live, c_new, cb)
        hb = jnp.where(live, o_g * jnp.tanh(c_new), hb)
        # max over held outputs == max over valid timesteps
        mxf = jnp.maximum(mxf, hf)
        mxb = jnp.maximum(mxb, hb)
    x = jnp.concatenate([mxf, mxb], axis=1)                      # (BB, H)
    x = jnp.maximum(jnp.dot(x.astype(jnp.bfloat16), w1_ref[...],
                            preferred_element_type=jnp.float32) + b1_ref[...], 0.0)
    x = jnp.maximum(jnp.dot(x.astype(jnp.bfloat16), w2_ref[...],
                            preferred_element_type=jnp.float32) + b2_ref[...], 0.0)
    logit = jnp.sum(x * wo_ref[...], axis=-1, keepdims=True) + bo_ref[...]
    out_ref[...] = jax.nn.sigmoid(logit)


@functools.lru_cache(maxsize=None)
def _lstm_head_call(bs_pad):
    return jax.jit(pl.pallas_call(
        _lstm_head_kernel,
        grid=(bs_pad // BB,),
        in_specs=[
            pl.BlockSpec((K_PAD, BB, H), lambda b: (0, b, 0)),  # subtree vecs, fwd (bf16)
            pl.BlockSpec((K_PAD, BB, H), lambda b: (0, b, 0)),  # subtree vecs, rev (bf16)
            pl.BlockSpec((BB, 1), lambda b: (b, 0)),            # subtrees per sample
            _const_spec((H, G2)), _const_spec((H, G2)),         # LSTM W_ih fwd/bwd
            _const_spec((HALF, G2)), _const_spec((HALF, G2)),   # LSTM W_hh fwd/bwd
            _const_spec((1, G2)), _const_spec((1, G2)),         # combined LSTM biases
            _const_spec((H, H2)), _const_spec((1, H2)),         # dense1 (BN folded)
            _const_spec((H2, H)), _const_spec((1, H)),          # dense2 (BN folded)
            _const_spec((1, H)), _const_spec((1, 1)),           # out_proj
        ],
        out_specs=pl.BlockSpec((BB, 1), lambda b: (b, 0)),
        out_shape=jax.ShapeDtypeStruct((bs_pad, 1), jnp.float32),
        scratch_shapes=[pltpu.VMEM((K_PAD * BB, G2), jnp.float32),
                        pltpu.VMEM((K_PAD * BB, G2), jnp.float32)],
        compiler_params=_cparams(1),
    ))


# ------------------------------- parameters ----------------------------------
def init_params(key):
    """Raw (torch-layout) parameters in float32."""
    ks = iter(jax.random.split(key, 48))
    s = 0.05

    def rn(shape):
        return s * jax.random.normal(next(ks), shape, jnp.float32)

    p = {}
    p['word_emb'] = rn((VOCAB, H))
    p['enc_w'] = rn((H, H)); p['enc_b'] = rn((H,))
    p['emb44'] = rn((AST_VOCAB, H))
    p['tree_w'] = rn((H, H)); p['tree_b'] = rn((H,))
    p['gru_wx'] = rn((H, 3 * H)); p['gru_wh'] = rn((H, 3 * H))
    p['gru_bx'] = rn((3 * H,));   p['gru_bh'] = rn((3 * H,))
    for d in ('f', 'b'):
        p[f'gru1_wx_{d}'] = rn((H, G1))
        p[f'gru1_wh_{d}'] = rn((HALF, G1))
        p[f'gru1_bx_{d}'] = rn((G1,))
        p[f'gru1_bh_{d}'] = rn((G1,))
        p[f'lstm_wx_{d}'] = rn((H, G2))
        p[f'lstm_wh_{d}'] = rn((HALF, G2))
        p[f'lstm_bx_{d}'] = rn((G2,))
        p[f'lstm_bh_{d}'] = rn((G2,))
    p['bn1_g'] = jnp.ones((H,), jnp.float32);  p['bn1_b'] = jnp.zeros((H,), jnp.float32)
    p['bn1_m'] = jnp.zeros((H,), jnp.float32); p['bn1_v'] = jnp.ones((H,), jnp.float32)
    p['bn2_g'] = jnp.ones((H2,), jnp.float32);  p['bn2_b'] = jnp.zeros((H2,), jnp.float32)
    p['bn2_m'] = jnp.zeros((H2,), jnp.float32); p['bn2_v'] = jnp.ones((H2,), jnp.float32)
    p['d1_w'] = rn((H, H2)); p['d1_b'] = rn((H2,))
    p['d2_w'] = rn((H2, H)); p['d2_b'] = rn((H,))
    p['out_w'] = rn((H, 1)); p['out_b'] = rn((1,))
    return p


def prepare_params(p):
    """Kernel-ready params: bf16 matmul weights, embedding table folded into the
    path-GRU input projection, GRU r/z biases pre-summed, eval BatchNorm
    (torch order BN -> Linear) folded into the adjacent dense layers."""
    bf = lambda w: w.astype(jnp.bfloat16)
    q = {'word_emb': p['word_emb']}
    q['enc_w'] = bf(p['enc_w']); q['enc_b'] = p['enc_b'].reshape(1, H)
    q['tree_w'] = bf(p['tree_w']); q['tree_b'] = p['tree_b'].reshape(1, H)
    # path GRU: gx(token v) = emb44[v] @ W_ih  -> one (44, 3H) table
    q['gru_gx_tbl'] = bf(p['emb44'] @ p['gru_wx'])
    bx, bh = p['gru_bx'], p['gru_bh']
    q['gru_bx'] = jnp.concatenate(
        [bx[:H] + bh[:H], bx[H:2 * H] + bh[H:2 * H], bx[2 * H:]]).reshape(1, 3 * H)
    q['gru_bhn'] = bh[2 * H:].reshape(1, H)
    q['gru_wh'] = bf(p['gru_wh'])
    for d in ('f', 'b'):
        q[f'gru1_wx_{d}'] = bf(p[f'gru1_wx_{d}'])
        q[f'gru1_wh_{d}'] = bf(p[f'gru1_wh_{d}'])
        bx, bh = p[f'gru1_bx_{d}'], p[f'gru1_bh_{d}']
        q[f'gru1_bx_{d}'] = jnp.concatenate(
            [bx[:HALF] + bh[:HALF], bx[HALF:2 * HALF] + bh[HALF:2 * HALF],
             bx[2 * HALF:]]).reshape(1, G1)
        q[f'gru1_bhn_{d}'] = bh[2 * HALF:].reshape(1, HALF)
        q[f'lstm_wx_{d}'] = bf(p[f'lstm_wx_{d}'])
        q[f'lstm_wh_{d}'] = bf(p[f'lstm_wh_{d}'])
        q[f'lstm_b_{d}'] = (p[f'lstm_bx_{d}'] + p[f'lstm_bh_{d}']).reshape(1, G2)
    s1 = p['bn1_g'] * jax.lax.rsqrt(p['bn1_v'] + EPS_BN)
    w1 = s1[:, None] * p['d1_w']
    b1 = p['d1_b'] + (p['bn1_b'] - p['bn1_m'] * s1) @ p['d1_w']
    s2 = p['bn2_g'] * jax.lax.rsqrt(p['bn2_v'] + EPS_BN)
    w2 = s2[:, None] * p['d2_w']
    b2 = p['d2_b'] + (p['bn2_b'] - p['bn2_m'] * s2) @ p['d2_w']
    q['d1_w'] = bf(w1); q['d1_b'] = b1.reshape(1, H2)
    q['d2_w'] = bf(w2); q['d2_b'] = b2.reshape(1, H)
    q['out_w'] = p['out_w'].reshape(1, H)   # used as an elementwise-reduce row
    q['out_b'] = p['out_b'].reshape(1, 1)
    return q


# -------------------- host-side ragged AST flattening / padding --------------
def _flatten_ast(train_AST, source_idx, bs):
    """Ragged python AST -> padded, time-major dense index tensors (host glue,
    mirrors the python loops of the torch reference)."""
    path_tokens, path_feat = [], []
    subtree_paths, sample_subtrees = [], []
    for i in range(bs):
        subtrees = train_AST[int(source_idx[i])]
        assert len(subtrees) <= K_PAD
        samp, idx = [], -1
        for k, subtree in enumerate(subtrees):
            assert 1 <= len(subtree) <= S_PAD
            if k == 0:
                assert len(subtree) == 1     # mirrors torch `k==0 and l==0` init path
            sub = []
            for path in subtree:
                idx += 1
                assert idx < CODE_LEN - 2
                assert 1 <= len(path) <= T_PAD
                sub.append(len(path_tokens))
                path_tokens.append(list(path))
                path_feat.append(i * (CODE_LEN - 2) + idx)
            samp.append(len(subtree_paths))
            subtree_paths.append(sub)
        sample_subtrees.append(samp)

    def _pad(n, mult):
        return max(mult, ((n + mult - 1) // mult) * mult)

    P_PAD = _pad(len(path_tokens), PB)
    NS_PAD = _pad(len(subtree_paths), SB)
    BS_PAD = _pad(bs, BB)

    path_tok = [[0] * P_PAD for _ in range(T_PAD)]
    path_len = [0.0] * P_PAD
    feat_idx = [0] * P_PAD
    for pi, toks in enumerate(path_tokens):
        path_len[pi] = float(len(toks))
        feat_idx[pi] = path_feat[pi]
        for t, tok in enumerate(toks):
            path_tok[t][pi] = int(tok)

    sub_fwd = [[0] * NS_PAD for _ in range(S_PAD)]
    sub_rev = [[0] * NS_PAD for _ in range(S_PAD)]
    sub_len = [0.0] * NS_PAD
    for si, pids in enumerate(subtree_paths):
        n = len(pids)
        sub_len[si] = float(n)
        for t in range(n):
            sub_fwd[t][si] = pids[t]
            sub_rev[t][si] = pids[n - 1 - t]

    samp_fwd = [[0] * BS_PAD for _ in range(K_PAD)]
    samp_rev = [[0] * BS_PAD for _ in range(K_PAD)]
    samp_len = [0.0] * BS_PAD
    for i, sids in enumerate(sample_subtrees):
        n = len(sids)
        samp_len[i] = float(n)
        for t in range(n):
            samp_fwd[t][i] = sids[t]
            samp_rev[t][i] = sids[n - 1 - t]

    j = jnp.asarray
    return (j(path_tok, jnp.int32), j(path_len, jnp.float32).reshape(P_PAD, 1),
            j(feat_idx, jnp.int32), P_PAD,
            j(sub_fwd, jnp.int32), j(sub_rev, jnp.int32),
            j(sub_len, jnp.float32).reshape(NS_PAD, 1), NS_PAD,
            j(samp_fwd, jnp.int32), j(samp_rev, jnp.int32),
            j(samp_len, jnp.float32).reshape(BS_PAD, 1), BS_PAD)


# ------------------------------ model forward --------------------------------
def model_forward(q, source_ids, source_position_idx, source_attn_mask,
                  source_label, source_idx, train_AST):
    bs, L = source_ids.shape
    # graph-guided token blending: tiny (L x L) mask math stays in plain XLA
    nodes_mask = (source_position_idx == 0)
    token_mask = (source_position_idx >= 2)
    emb = jnp.take(q['word_emb'], source_ids, axis=0)              # (bs, L, H)
    m = (nodes_mask[:, :, None] & token_mask[:, None, :]
         & source_attn_mask).astype(jnp.float32)
    m = m / (jnp.sum(m, axis=-1, keepdims=True) + 1e-10)
    avg = jnp.einsum('blk,bkh->blh', m, emb)
    nodes_f = nodes_mask.astype(jnp.float32)[:, :, None]
    blended = emb * (1.0 - nodes_f) + avg * nodes_f

    # encoder stand-in: one lane-dense (bs*L, H) dense + tanh Pallas kernel
    R = bs * L
    R_PAD = max(8, -(-R // 8) * 8)
    x = blended.reshape(R, H)
    if R_PAD != R:
        x = jnp.pad(x, ((0, R_PAD - R), (0, 0)))
    feat = _encoder_call(R_PAD)(x, q['enc_w'], q['enc_b'])[:R].reshape(bs, L, H)
    feature_s = feat[:, 1:CODE_LEN - 1]                            # (bs, 8, H)
    feature_flat = feature_s.reshape(bs * (CODE_LEN - 2), H)

    (path_tok, path_len, feat_idx, P_PAD,
     sub_fwd, sub_rev, sub_len, NS_PAD,
     samp_fwd, samp_rev, samp_len, BS_PAD) = _flatten_ast(train_AST, source_idx, bs)

    # stage 1: batched path GRU (embedding folded into the gx table) + `tree`
    path_onehot = jax.nn.one_hot(path_tok, AST_VOCAB, dtype=jnp.float32)
    feat_rows = jnp.take(feature_flat, feat_idx, axis=0)           # (P_PAD, H)
    leafs = _path_gru_call(P_PAD)(
        path_onehot, path_len, feat_rows,
        q['gru_gx_tbl'], q['gru_bx'], q['gru_wh'], q['gru_bhn'],
        q['tree_w'], q['tree_b'])                                  # (P_PAD, H) bf16

    # stage 2: fused bidirectional GRU1 per subtree (max over paths + relu)
    xf = jnp.take(leafs, sub_fwd, axis=0)                          # (S_PAD, NS_PAD, H)
    xb = jnp.take(leafs, sub_rev, axis=0)
    sub_vecs = _bi_gru_call(NS_PAD)(
        xf, xb, sub_len,
        q['gru1_wx_f'], q['gru1_wx_b'], q['gru1_wh_f'], q['gru1_wh_b'],
        q['gru1_bx_f'], q['gru1_bx_b'], q['gru1_bhn_f'], q['gru1_bhn_b'])

    # stage 3: fused bidirectional LSTM over subtree vectors + classification head
    lf = jnp.take(sub_vecs, samp_fwd, axis=0)                      # (K_PAD, BS_PAD, H)
    lb = jnp.take(sub_vecs, samp_rev, axis=0)
    prob_pad = _lstm_head_call(BS_PAD)(
        lf, lb, samp_len,
        q['lstm_wx_f'], q['lstm_wx_b'], q['lstm_wh_f'], q['lstm_wh_b'],
        q['lstm_b_f'], q['lstm_b_b'],
        q['d1_w'], q['d1_b'], q['d2_w'], q['d2_b'], q['out_w'], q['out_b'])
    prob = prob_pad[:bs]                                           # (bs, 1)

    labels = source_label[:, None].astype(jnp.float32)
    p_clip = jnp.clip(prob, 1e-7, 1.0 - 1e-7)    # BCE stability (avoid log(0))
    loss = -jnp.mean(labels * jnp.log(p_clip)
                     + (1.0 - labels) * jnp.log(1.0 - p_clip))
    return loss, prob


# ---------------------------------- main --------------------------------------
if __name__ == "__main__":
    key = jax.random.PRNGKey(0)
    pkey, dkey = jax.random.split(key)
    params = prepare_params(init_params(pkey))

    source_ids = jax.random.randint(dkey, (BATCH, SEQ), 0, VOCAB, jnp.int32)
    source_position_idx = jnp.tile(
        jnp.array([[1, 2, 3, 4, 5, 6, 7, 8, 9, 10, 0, 0]], jnp.int32), (BATCH, 1))
    source_attn_mask = jnp.ones((BATCH, SEQ, SEQ), jnp.bool_)
    source_label = jnp.array([0.0, 1.0], jnp.float32)
    source_idx = jnp.array([0, 1], jnp.int32)
    # ragged AST data (host-side python, exactly like the torch reference);
    # first subtree of each sample has one path (matches the `k==0 and l==0` init)
    train_AST = [
        [[[1, 2, 3]], [[4, 5, 6], [7, 8, 9]]],
        [[[10, 11, 12]], [[13, 14], [15, 16, 17]]],
    ]

    loss, prob = model_forward(params, source_ids, source_position_idx,
                               source_attn_mask, source_label, source_idx,
                               train_AST)
    jax.block_until_ready((loss, prob))
    assert prob.shape == (BATCH, 1)
    assert bool(jnp.isfinite(loss)) and bool(jnp.all(jnp.isfinite(prob)))
    print("KERNEL_OK")
</pallas_src>

<mosaic_0001>
module attributes {stable_mosaic.version = 11 : i64} {
  func.func @_k(%arg0: i32, %arg1: memref<8x128xf32, #tpu.memory_space<vmem>>, %arg2: memref<8x128xf32, #tpu.memory_space<vmem>>) attributes {dimension_semantics = [#tpu.dimension_semantics<arbitrary>], iteration_bounds = array<i64: 2>, scalar_prefetch = 0 : i64, scratch_operands = 0 : i64, tpu.core_type = #tpu.core_type<tc>, window_params = [{pipeline_mode = #tpu.pipeline_mode<synchronous>, transform_indices = @transform_0, window_bounds = array<i64: 8, 128>}, {transform_indices = @transform_1, window_bounds = array<i64: 8, 128>}]} {
    %c0 = arith.constant 0 : index
    %c0_0 = arith.constant 0 : index
    %0 = vector.load %arg1[%c0, %c0_0] : memref<8x128xf32, #tpu.memory_space<vmem>>, vector<8x128xf32>
    %cst = arith.constant 1.000000e+00 : f32
    %1 = vector.broadcast %cst : f32 to vector<8x128xf32>
    %2 = arith.addf %0, %1 : vector<8x128xf32>
    %c0_1 = arith.constant 0 : index
    %c0_2 = arith.constant 0 : index
    %3 = vector.load %arg2[%c0_1, %c0_2] : memref<8x128xf32, #tpu.memory_space<vmem>>, vector<8x128xf32>
    tpu.vector_store %arg2[%c0_1, %c0_2], %2 {strides = array<i32>} : memref<8x128xf32, #tpu.memory_space<vmem>>, vector<8x128xf32>,
    return
  }
  func.func @transform_0(%arg0: i32) -> (i32, i32) {
    %c0_i32 = arith.constant 0 : i32
    %c0_i32_0 = arith.constant 0 : i32
    %c0_i32_1 = arith.constant 0 : i32
    return %c0_i32, %c0_i32_0 : i32, i32
  }
  func.func @transform_1(%arg0: i32) -> (i32, i32) {
    %c0_i32 = arith.constant 0 : i32
    %c0_i32_0 = arith.constant 0 : i32
    return %arg0, %c0_i32 : i32, i32
  }
}

module attributes {stable_mosaic.version = 11 : i64} {
  func.func @_encoder_dense_kernel(%arg0: i32, %arg1: memref<24x768xf32, #tpu.memory_space<vmem>>, %arg2: memref<768x768xbf16, #tpu.memory_space<vmem>>, %arg3: memref<1x768xf32, #tpu.memory_space<vmem>>, %arg4: memref<24x768xf32, #tpu.memory_space<vmem>>) attributes {dimension_semantics = [#tpu.dimension_semantics<parallel>], iteration_bounds = array<i64: 1>, scalar_prefetch = 0 : i64, scratch_operands = 0 : i64, tpu.core_type = #tpu.core_type<tc>, window_params = [{pipeline_mode = #tpu.pipeline_mode<synchronous>, transform_indices = @transform_0, window_bounds = array<i64: 24, 768>}, {pipeline_mode = #tpu.pipeline_mode<synchronous>, transform_indices = @transform_1, window_bounds = array<i64: 768, 768>}, {pipeline_mode = #tpu.pipeline_mode<synchronous>, transform_indices = @transform_2, window_bounds = array<i64: 1, 768>}, {pipeline_mode = #tpu.pipeline_mode<synchronous>, transform_indices = @transform_3, window_bounds = array<i64: 24, 768>}]} {
    %c0 = arith.constant 0 : index
    %c0_0 = arith.constant 0 : index
    %0 = vector.load %arg1[%c0, %c0_0] : memref<24x768xf32, #tpu.memory_space<vmem>>, vector<24x768xf32>
    %1 = arith.truncf %0 : vector<24x768xf32> to vector<24x768xbf16>
    %c0_1 = arith.constant 0 : index
    %c0_2 = arith.constant 0 : index
    %2 = vector.load %arg2[%c0_1, %c0_2] : memref<768x768xbf16, #tpu.memory_space<vmem>>, vector<768x768xbf16>
    %cst = arith.constant dense<0.000000e+00> : vector<24x768xf32>
    %3 = tpu.matmul %1, %2, %cst {dimension_numbers = #tpu.dot_dimension_numbers<[1], [0], [0], [1], [0, 0, 1, 1], [], []>} : vector<24x768xbf16>, vector<768x768xbf16>, vector<24x768xf32> -> vector<24x768xf32>
    %c0_3 = arith.constant 0 : index
    %c0_4 = arith.constant 0 : index
    %4 = vector.load %arg3[%c0_3, %c0_4] : memref<1x768xf32, #tpu.memory_space<vmem>>, vector<1x768xf32>
    %5 = vector.broadcast %4 : vector<1x768xf32> to vector<24x768xf32>
    %6 = arith.addf %3, %5 : vector<24x768xf32>
    %7 = math.tanh %6 : vector<24x768xf32>
    %c0_5 = arith.constant 0 : index
    %c0_6 = arith.constant 0 : index
    %8 = vector.load %arg4[%c0_5, %c0_6] : memref<24x768xf32, #tpu.memory_space<vmem>>, vector<24x768xf32>
    tpu.vector_store %arg4[%c0_5, %c0_6], %7 {strides = array<i32>} : memref<24x768xf32, #tpu.memory_space<vmem>>, vector<24x768xf32>,
    return
  }
  func.func @transform_0(%arg0: i32) -> (i32, i32) {
    %c0_i32 = arith.constant 0 : i32
    %c0_i32_0 = arith.constant 0 : i32
    %c0_i32_1 = arith.constant 0 : i32
    return %c0_i32, %c0_i32_0 : i32, i32
  }
  func.func @transform_1(%arg0: i32) -> (i32, i32) {
    %c0_i32 = arith.constant 0 : i32
    %c0_i32_0 = arith.constant 0 : i32
    %c0_i32_1 = arith.constant 0 : i32
    return %c0_i32, %c0_i32_0 : i32, i32
  }
  func.func @transform_2(%arg0: i32) -> (i32, i32) {
    %c0_i32 = arith.constant 0 : i32
    %c0_i32_0 = arith.constant 0 : i32
    %c0_i32_1 = arith.constant 0 : i32
    return %c0_i32, %c0_i32_0 : i32, i32
  }
  func.func @transform_3(%arg0: i32) -> (i32, i32) {
    %c0_i32 = arith.constant 0 : i32
    %c0_i32_0 = arith.constant 0 : i32
    %c0_i32_1 = arith.constant 0 : i32
    return %c0_i32, %c0_i32_0 : i32, i32
  }
}

</mosaic_0001>

<bundles_post_ra>
// kernel: tpu_custom_call.1
= control target key start
LH: loop header
LB: loop body
LE: loop exit
PB: predicated region body
PF: predicated region fallthrough
CT: control target
= control target key end

     0   :  { %6 = vsyncpa [#allocation3], 0  ;;  %s448_s0 = inlined_call_operand.hbm [shape: f32[8,128], index: 0, kind: input, shape index: {}]   ;;  %s449_s1 = inlined_call_operand.hbm [shape: f32[16,128], index: 1, kind: output, shape index: {}]  }
   0x1   :  { %7 = vsyncpa [#allocation4], 0 }
   0x2   :  { %9 = vsyncpa [#allocation4 + $0x1], 0  ;;  %s348_s6 = smov 0   ;;  %s350_s7 = smov 0  }
   0x3   :  { %s352_s8 = smov 0   ;;  %s354_s9 = smov 0  }
   0x4 LB: > { %s369_s10 = sadd.s32 4294967295, %s334_s9   ;;  %s184_s11 = sadd.s32 4294967294, %s334_s9   ;;  %s334_s9 = sphi %s354_s9, %s457_s9   ;;  %s330_s8 = sphi %s352_s8, %s456_s8   ;;  %s326_s7 = sphi %s350_s7, %s455_s7   ;;  %s322_s6 = sphi %s348_s6, %s454_s6  }
   0x5   : > { %s373_s12 = sadd.s32 1, %s334_s9   ;;  %s43_s13 = sadd.s32 1, %s330_s8 }
   0x6   : > { %s40_s14 = ssub.s32 %s334_s9, %s373_s12  ;;  %p53_p0 = scmp.ne.s32.totalorder %s330_s8, %s326_s7 }
   0x7   : > { %p41_p1 = scmp.eq.s32.totalorder %s40_s14, 0  ;;  %p54_p2 = scmp.eq.s32.totalorder %s369_s10, 1 }
   0x8   : > { %p59_p3 = scmp.ne.s32.totalorder %s326_s7, %s322_s6  ;;  %p60_p4 = scmp.eq.s32.totalorder %s184_s11, 1 }
   0x9   : > { %s384_s15 = scalar_select %p41_p1, %s330_s8, %s43_s13  }
   0xa   : > { %p386_p5 = por %p54_p2, %p53_p0  ;;  %p390_p6 = por %p60_p4, %p59_p3 }
   0xb   : > { %p185_p7 = scmp.ge.s32.totalorder %s334_s9, 1  ;;  %p67_p8 = scmp.lt.s32.totalorder %s334_s9, 3 }
   0xc   : > { %s451_s17 = scalar_select %p390_p6, 1, 0 }
   0xd   : > { %p208_p9 = scmp.eq.s32.totalorder %s369_s10, 0  ;;  %p397_p10 = pnand %p185_p7, %p67_p8 }
   0xe   : > { %s336_s19 = smov [#allocation2]  }
   0xf   : > { %s80_s20 = sshll.u32 %s336_s19, 4  ;;  %p200_p11 = pneg %p397_p10  ;;  %s81_s20 = int_to_ptr.vmem [resolvable:$true] %s80_s20 }
  0x10   : > { %s255_s21 = scalar_lea.vmem %s81_s20, 128  ;;  %p263_p3 = scmp.lt.s32.totalorder %s81_s20, %s81_s20 }
  0x11   : > { %p201_p12 = pnand %p208_p9, %p200_p11  ;;  %p256_p0 = scmp.ne.s32.totalorder %s81_s20, %s255_s21 }
  0x12   : > { %p264_p4 = scmp.lt.s32.totalorder %s255_s21, %s255_s21 }
  0x13   : > { %p246_p13 = pneg %p201_p12 }
  0x14   : > { %p265_p6 = por %p264_p4, %p263_p3 }
  0x15   : > { %p258_p1 = pnand %p256_p0, %p246_p13 }
  0x17   : > { %p259_p2 = pneg %p258_p1 }
  0x19   : > { %p266_p7 = pnand %p265_p6, %p259_p2 }
  0x1b   : > { %269 = shalt.err (!%p266_p7)
}
  0x1c   : > { %203 = dma.hbm_to_vmem [thread:$0]  (!%p201_p12), %s448_s0, 128, %s81_s20, [#allocation3]  }
  0x1d   : > { %93 = sbr.rel (%p397_p10) target bundleno = 60 (0x3c), region = 24 }
  0x22   : > { %313 = dma.done.wait (%p208_p9), [#allocation3], 128  }
  0x23   : > { %315 = vsyncadd (%p208_p9), [#allocation3], 4294967168  ;;  %s105_s24 = sand.u32 1, %s326_s7   ;;  %s191_s28 = sshll.u32 %s369_s10, 7  ;;  %v108_v0 = vld [vmem:[#allocation2] sm:$0xff] }
  0x24   : > { %s189_s25 = sshll.u32 %s105_s24, 3  ;;  %v109_v1 = vadd.f32 1.0, %v108_v0  ;;  %s123_s2 = scalar_lea.hbm %s449_s1, %s191_s28 }
  0x25   : > { %s107_s26 = scalar_lea.vmem [#allocation5], %s189_s25  ;;  %s112_s3 = scalar_lea.sflag [#allocation4], %s105_s24 }
  0x26   : > { %s125_s27 = sshll.u32 %s107_s26, 4  ;;  %110 = vst [vmem:[%s107_s26] sm:$0xff] %v109_v1  ;;  %s337_s5 = smov [#allocation5]   ;;  %s126_s27 = int_to_ptr.vmem [resolvable:$true] %s125_s27 }
  0x27   : > { %s270_s4 = scalar_lea.vmem %s126_s27, 128  ;;  %s274_s11 = sshll.u32 %s337_s5, 4  ;;  %s275_s11 = int_to_ptr.vmem [resolvable:$false] %s274_s11 }
  0x28   : > { %p271_p6 = scmp.ne.s32.totalorder %s126_s27, %s270_s4  ;;  %s276_s13 = scalar_lea.vmem %s275_s11, 256 }
  0x29   : > { %p277_p10 = scmp.lt.s32.totalorder %s126_s27, %s275_s11  ;;  %p278_p11 = scmp.lt.s32.totalorder %s276_s13, %s270_s4 }
  0x2a   : > { %p272_p8 = pnand %p271_p6, %p386_p5 }
  0x2b   : > { %p279_p12 = por %p278_p11, %p277_p10 }
  0x2c   : > { %p273_p9 = pneg %p272_p8 }
  0x2e   : > { %p280_p13 = pnand %p279_p12, %p273_p9 }
  0x30   : > { %283 = shalt.err (!%p280_p13)
}
  0x31   : > { %s284_s10 = scalar_lea.hbm %s123_s2, 128  ;;  %s288_s19 = scalar_lea.hbm %s449_s1, 256 }
  0x32   : > { %p285_p0 = scmp.ne.s32.totalorder %s123_s2, %s284_s10  ;;  %p289_p3 = scmp.lt.s32.totalorder %s123_s2, %s449_s1 }
  0x33   : > { %p290_p4 = scmp.lt.s32.totalorder %s288_s19, %s284_s10 }
  0x34   : > { %p286_p1 = pnand %p285_p0, %p386_p5 }
  0x35   : > { %p291_p7 = por %p290_p4, %p289_p3 }
  0x36   : > { %p287_p2 = pneg %p286_p1 }
  0x38   : > { %p292_p6 = pnand %p291_p7, %p287_p2 }
  0x3a   : > { %295 = shalt.err (!%p292_p6)
}
  0x3b   : > { %198 = dma.vmem_to_hbm [thread:$0]  (%p386_p5), %s126_s27, 128, %s123_s2, %s112_s3  }
  0x3c PF: > { %p210_p8 = scmp.ge.s32.totalorder %s334_s9, 2  ;;  %s137_s22 = sand.u32 1, %s322_s6  }
  0x3d   : > { %p453_p9 = scmp.ne.s32.totalorder %s451_s17, 0  ;;  %s138_s23 = scalar_lea.sflag [#allocation4], %s137_s22 }
  0x3f   : > { %p205_p10 = pnand %p210_p8, %p453_p9 }
  0x41   : > { %p206_p11 = pneg %p205_p10 }
  0x43   : > { %317 = dma.done.wait (%p206_p11), %s138_s23, 128  }
  0x44   : > { %319 = vsyncadd (%p206_p11), %s138_s23, 4294967168  ;;  %p12_p12 = scmp.ge.s32.totalorder %s373_s12, 4   ;;  %s454_s6 = smov %s326_s7 }
  0x45   : > { %s455_s7 = smov %s330_s8  ;;  %s456_s8 = smov %s384_s15 }
  0x46   : > { %s457_s9 = smov %s373_s12  ;;  %14 = sbr.rel (!%p12_p12) target bundleno = 4 (0x4), region = 61 }
  0x4b   :  { %143 = vsyncpa [#allocation3], 1 }
  0x4c   :  { %145 = vsyncpa [#allocation3 + $0x1], 1 }
  0x4d   :  { %146 = vsyncpa [#allocation4], 1 }
  0x4e   :  { %148 = vsyncpa [#allocation4 + $0x1], 1 }

// kernel: tpu_custom_call.1
= control target key start
LH: loop header
LB: loop body
LE: loop exit
PB: predicated region body
PF: predicated region fallthrough
CT: control target
= control target key end

     0   :  { %8 = vsyncpa [#allocation3], 0  ;;  %s3397_s0 = inlined_call_operand.hbm [shape: f32[24,768], index: 0, kind: input, shape index: {}]   ;;  %s3398_s1 = inlined_call_operand.hbm [shape: bf16[768,768], index: 1, kind: input, shape index: {}]   ;;  %s3399_s2 = inlined_call_operand.hbm [shape: f32[1,768], index: 2, kind: input, shape index: {}]   ;;  %s3400_s3 = inlined_call_operand.hbm [shape: f32[24,768], index: 3, kind: output, shape index: {}]  }
   0x1   :  { %9 = vsyncpa [#allocation6], 0 }
   0x2   :  { %10 = vsyncpa [#allocation4], 0  ;;  %s3239_s12 = smov [#allocation5]  }
   0x3   :  { %s28_s13 = sshll.u32 %s3239_s12, 4  ;;  %s29_s13 = int_to_ptr.vmem [resolvable:$true] %s28_s13 }
   0x4   :  { %s3161_s14 = scalar_lea.vmem %s29_s13, 36864  ;;  %p3166_p1 = scmp.lt.s32.totalorder %s29_s13, %s29_s13 }
   0x5   :  { %p3162_p0 = scmp.ne.s32.totalorder %s29_s13, %s3161_s14  ;;  %p3167_p2 = scmp.lt.s32.totalorder %s3161_s14, %s3161_s14 }
   0x7   :  { %p3168_p3 = por %p3167_p2, %p3166_p1 }
   0x9   :  { %p3169_p4 = pnand %p3168_p3, %p3162_p0 }
   0xb   :  { %3172 = shalt.err (!%p3169_p4)
}
   0xc   :  { %s3240_s15 = smov 384   ;;  %s3241_s16 = smov 24  }
   0xd   :  { %34 = dma.hbm_to_vmem [thread:$0]  %s3398_s1, 36864, %s29_s13, [#allocation6], %s3240_s15, %s3240_s15, %s3241_s16  }
   0xe   :  { %s3242_s19 = smov [#allocation2]  }
   0xf   :  { %s16_s20 = sshll.u32 %s3242_s19, 4  ;;  %s17_s20 = int_to_ptr.vmem [resolvable:$true] %s16_s20 }
  0x10   :  { %s3181_s21 = scalar_lea.vmem %s17_s20, 2304  ;;  %p3186_p6 = scmp.lt.s32.totalorder %s17_s20, %s17_s20 }
  0x11   :  { %p3182_p5 = scmp.ne.s32.totalorder %s17_s20, %s3181_s21  ;;  %p3187_p7 = scmp.lt.s32.totalorder %s3181_s21, %s3181_s21 }
  0x13   :  { %p3188_p8 = por %p3187_p7, %p3186_p6 }
  0x15   :  { %p3189_p9 = pnand %p3188_p8, %p3182_p5 }
  0x17   :  { %3192 = shalt.err (!%p3189_p9)
}
  0x18   :  { %s3243_s22 = smov 768   ;;  %s3244_s23 = smov 48  }
  0x19   :  { %22 = dma.hbm_to_vmem [thread:$0]  %s3397_s0, 2304, %s17_s20, [#allocation3], %s3243_s22, %s3243_s22, %s3244_s23  }
  0x1a   :  { %s3245_s1 = smov [#allocation7]  }
  0x1b   :  { %s41_s26 = sshll.u32 %s3245_s1, 4  ;;  %s42_s26 = int_to_ptr.vmem [resolvable:$true] %s41_s26 }
  0x1c   :  { %s3201_s27 = scalar_lea.vmem %s42_s26, 96  ;;  %p3206_p11 = scmp.lt.s32.totalorder %s42_s26, %s42_s26 }
  0x1d   :  { %p3202_p10 = scmp.ne.s32.totalorder %s42_s26, %s3201_s27  ;;  %p3207_p12 = scmp.lt.s32.totalorder %s3201_s27, %s3201_s27 }
  0x1f   :  { %p3208_p13 = por %p3207_p12, %p3206_p11 }
  0x21   :  { %p3209_p0 = pnand %p3208_p13, %p3202_p10 }
  0x23   :  { %3212 = shalt.err (!%p3209_p0)
}
  0x24   :  { %44 = dma.hbm_to_vmem [thread:$0]  %s3399_s2, 96, %s42_s26, [#allocation6]  }
  0x25   :  { %3233 = dma.done.wait [#allocation3], 2304  }
  0x26   :  { %3234 = vsyncadd [#allocation3], 4294964992 }
  0x27   :  { %3235 = dma.done.wait [#allocation6], 36960  }
  0x28   :  { %3236 = vsyncadd [#allocation6], 4294930336  ;;  %v2685_v0 = vld [vmem:[#allocation5 + $0x154] ss:$24 sps:$4 sm:$0xff]   ;;  %v2689_v2 = vld [vmem:[#allocation5 + $0x150] ss:$24 sps:$4 sm:$0xff]  }
  0x29   :  { %v2687_v1 = vld [vmem:[#allocation5 + $0x454] ss:$24 sps:$4 sm:$0xff]   ;;  %1844 = vmatprep.subr.bf16.mxu0 %v2685_v0  ;;  %v2690_v3 = vld [vmem:[#allocation5 + $0x450] ss:$24 sps:$4 sm:$0xff]   ;;  %v2691_v4 = vld [vmem:[#allocation5 + $0x124] ss:$24 sps:$4 sm:$0xff]  }
  0x2a   :  { %1895 = vmatprep.subr.bf16.mxu1 %v2687_v1  ;;  %1845 = vmatpush1.bf16.msra.mxu0 %v2689_v2  ;;  %v2693_v5 = vld [vmem:[#allocation5 + $0x424] ss:$24 sps:$4 sm:$0xff]   ;;  %v2695_v6 = vld [vmem:[#allocation5 + $0x120] ss:$24 sps:$4 sm:$0xff]   ;;  %v2697_v8 = vld [vmem:[#allocation5 + $0xf4] ss:$24 sps:$4 sm:$0xff]  }
  0x2b   :  { %1896 = vmatpush1.bf16.msra.mxu1 %v2690_v3  ;;  %1846 = vmatprep.subr.bf16.mxu0 %v2691_v4  ;;  %v2696_v7 = vld [vmem:[#allocation5 + $0x420] ss:$24 sps:$4 sm:$0xff]   ;;  %v2699_v9 = vld [vmem:[#allocation5 + $0x3f4] ss:$24 sps:$4 sm:$0xff]   ;;  %v2701_v10 = vld [vmem:[#allocation5 + $0xf0] ss:$24 sps:$4 sm:$0xff]  }
  0x2c   :  { %1897 = vmatprep.subr.bf16.mxu1 %v2693_v5  ;;  %v2702_v11 = vld [vmem:[#allocation5 + $0x3f0] ss:$24 sps:$4 sm:$0xff]   ;;  %v2703_v12 = vld [vmem:[#allocation5 + $0xc4] ss:$24 sps:$4 sm:$0xff]   ;;  %v2707_v14 = vld [vmem:[#allocation5 + $0xc0] ss:$24 sps:$4 sm:$0xff]  }
  0x2d   :  { %v2705_v13 = vld [vmem:[#allocation5 + $0x3c4] ss:$24 sps:$4 sm:$0xff]   ;;  %v2708_v15 = vld [vmem:[#allocation5 + $0x3c0] ss:$24 sps:$4 sm:$0xff]   ;;  %v2709_v16 = vld [vmem:[#allocation5 + $0x94] ss:$24 sps:$4 sm:$0xff]  }
  0x2e   :  { %1847 = vmatpush1.bf16.msra.mxu0 %v2695_v6  ;;  %v2711_v17 = vld [vmem:[#allocation5 + $0x394] ss:$24 sps:$4 sm:$0xff]   ;;  %v2713_v18 = vld [vmem:[#allocation5 + $0x90] ss:$24 sps:$4 sm:$0xff]   ;;  %v2715_v20 = vld [vmem:[#allocation5 + $0x64] ss:$24 sps:$4 sm:$0xff]  }
  0x2f   :  { %1898 = vmatpush1.bf16.msra.mxu1 %v2696_v7  ;;  %1848 = vmatprep.subr.bf16.mxu0 %v2697_v8  ;;  %v2714_v19 = vld [vmem:[#allocation5 + $0x390] ss:$24 sps:$4 sm:$0xff]   ;;  %v2717_v21 = vld [vmem:[#allocation5 + $0x364] ss:$24 sps:$4 sm:$0xff]   ;;  %v2719_v22 = vld [vmem:[#allocation5 + $0x60] ss:$24 sps:$4 sm:$0xff]  }
  0x30   :  { %1899 = vmatprep.subr.bf16.mxu1 %v2699_v9  ;;  %v2720_v23 = vld [vmem:[#allocation5 + $0x360] ss:$24 sps:$4 sm:$0xff]   ;;  %v2721_v24 = vld [vmem:[#allocation5 + $0x34] ss:$24 sps:$4 sm:$0xff]   ;;  %v2725_v26 = vld [vmem:[#allocation5 + $0x30] ss:$24 sps:$4 sm:$0xff]  }
  0x31   :  { %v2723_v25 = vld [vmem:[#allocation5 + $0x334] ss:$24 sps:$4 sm:$0xff]   ;;  %v2726_v27 = vld [vmem:[#allocation5 + $0x330] ss:$24 sps:$4 sm:$0xff]   ;;  %v2727_v28 = vld [vmem:[#allocation5 + $0x4] ss:$24 sps:$4 sm:$0xff]  }
  0x32   :  { %1849 = vmatpush1.bf16.msra.mxu0 %v2701_v10  ;;  %v2729_v29 = vld [vmem:[#allocation5 + $0x304] ss:$24 sps:$4 sm:$0xff]   ;;  %v2731_v30 = vld [vmem:[#allocation5] ss:$24 sps:$4 sm:$0xff]   ;;  %v2733_v32 = vld [vmem:[#allocation5 + $0x2d4] ss:$24 sps:$4 sm:$0xff]  }
  0x33   :  { %1900 = vmatpush1.bf16.msra.mxu1 %v2702_v11  ;;  %1850 = vmatprep.subr.bf16.mxu0 %v2703_v12  ;;  %v2732_v31 = vld [vmem:[#allocation5 + $0x300] ss:$24 sps:$4 sm:$0xff]   ;;  %v2735_v33 = vld [vmem:[#allocation5 + $0x5d4] ss:$24 sps:$4 sm:$0xff]   ;;  %v2737_v34 = vld [vmem:[#allocation5 + $0x2d0] ss:$24 sps:$4 sm:$0xff]  }
  0x34   :  { %1901 = vmatprep.subr.bf16.mxu1 %v2705_v13  ;;  %v2738_v35 = vld [vmem:[#allocation5 + $0x5d0] ss:$24 sps:$4 sm:$0xff]   ;;  %v2739_v36 = vld [vmem:[#allocation5 + $0x2a4] ss:$24 sps:$4 sm:$0xff]   ;;  %v2743_v38 = vld [vmem:[#allocation5 + $0x2a0] ss:$24 sps:$4 sm:$0xff]  }
  0x35   :  { %v2741_v37 = vld [vmem:[#allocation5 + $0x5a4] ss:$24 sps:$4 sm:$0xff]   ;;  %v2744_v39 = vld [vmem:[#allocation5 + $0x5a0] ss:$24 sps:$4 sm:$0xff]   ;;  %v2745_v40 = vld [vmem:[#allocation5 + $0x274] ss:$24 sps:$4 sm:$0xff]  }
  0x36   :  { %1851 = vmatpush1.bf16.msra.mxu0 %v2707_v14  ;;  %v2747_v41 = vld [vmem:[#allocation5 + $0x574] ss:$24 sps:$4 sm:$0xff]   ;;  %v2749_v42 = vld [vmem:[#allocation5 + $0x270] ss:$24 sps:$4 sm:$0xff]   ;;  %v2751_v44 = vld [vmem:[#allocation5 + $0x244] ss:$24 sps:$4 sm:$0xff]  }
  0x37   :  { %1902 = vmatpush1.bf16.msra.mxu1 %v2708_v15  ;;  %1852 = vmatprep.subr.bf16.mxu0 %v2709_v16  ;;  %v2750_v43 = vld [vmem:[#allocation5 + $0x570] ss:$24 sps:$4 sm:$0xff]   ;;  %v2753_v45 = vld [vmem:[#allocation5 + $0x544] ss:$24 sps:$4 sm:$0xff]   ;;  %v2755_v50 = vld [vmem:[#allocation5 + $0x240] ss:$24 sps:$4 sm:$0xff]  }
  0x38   :  { %1903 = vmatprep.subr.bf16.mxu1 %v2711_v17  ;;  %v55_v46 = vld [vmem:[#allocation2 + $0x8] sm:$0xff]  ;;  %v61_v47 = vld [vmem:[#allocation2 + $0x38] sm:$0xff]  ;;  %v54_v6 = vld [vmem:[#allocation2] sm:$0xff]  ;;  %s3246_s0 = smov [#allocation8]  }
  0x39   :  { %v57_v48 = vld [vmem:[#allocation2 + $0x18] sm:$0xff]  ;;  %v63_v49 = vld [vmem:[#allocation2 + $0x48] sm:$0xff]  ;;  %v3279_v53 = vpack.c.bf16 %v61_v47, %v55_v46  ;;  %v60_v7 = vld [vmem:[#allocation2 + $0x30] sm:$0xff]  ;;  %s2344_s2 = sshll.u32 %s3246_s0, 4  ;;  %s2345_s2 = int_to_ptr.vmem [resolvable:$true] %s2344_s2 }
  0x3a   :  { %1853 = vmatpush1.bf16.msra.mxu0 %v2713_v18  ;;  %v2756_v51 = vld [vmem:[#allocation5 + $0x540] ss:$24 sps:$4 sm:$0xff]   ;;  %v2757_v52 = vld [vmem:[#allocation5 + $0x214] ss:$24 sps:$4 sm:$0xff]   ;;  %v3281_v54 = vpack.c.bf16 %v63_v49, %v57_v48  ;;  %v2761_v56 = vld [vmem:[#allocation5 + $0x210] ss:$24 sps:$4 sm:$0xff]   ;;  %v3285_v12 = vpack.c.bf16 %v60_v7, %v54_v6  ;;  %p3218_p2 = scmp.lt.s32.totalorder %s2345_s2, %s2345_s2 }
  0x3b   :  { %1904 = vmatpush1.bf16.msra.mxu1 %v2714_v19  ;;  %1854 = vmatprep.subr.bf16.mxu0 %v2715_v20  ;;  %v2759_v55 = vld [vmem:[#allocation5 + $0x514] ss:$24 sps:$4 sm:$0xff]   ;;  %v2762_v57 = vld [vmem:[#allocation5 + $0x510] ss:$24 sps:$4 sm:$0xff]   ;;  %v2763_v58 = vld [vmem:[#allocation5 + $0x1e4] ss:$24 sps:$4 sm:$0xff]  }
  0x3c   :  { %1905 = vmatprep.subr.bf16.mxu1 %v2717_v21  ;;  %1876 = vmatprep.mubr.bf16.mxu0 %v3279_v53  ;;  %v2765_v59 = vld [vmem:[#allocation5 + $0x4e4] ss:$24 sps:$4 sm:$0xff]   ;;  %v2767_v60 = vld [vmem:[#allocation5 + $0x1e0] ss:$24 sps:$4 sm:$0xff]   ;;  %v2769_v62 = vld [vmem:[#allocation5 + $0x1b4] ss:$24 sps:$4 sm:$0xff]  }
  0x3d   :  { %1927 = vmatprep.mubr.bf16.mxu1 %v3281_v54  ;;  %v2768_v61 = vld [vmem:[#allocation5 + $0x4e0] ss:$24 sps:$4 sm:$0xff]   ;;  %v2771_v63 = vld [vmem:[#allocation5 + $0x4b4] ss:$24 sps:$4 sm:$0xff]   ;;  %v2773_v0 = vld [vmem:[#allocation5 + $0x1b0] ss:$24 sps:$4 sm:$0xff]  }
  0x3e   :  { %1855 = vmatpush1.bf16.msra.mxu0 %v2719_v22  ;;  %v2774_v1 = vld [vmem:[#allocation5 + $0x4b0] ss:$24 sps:$4 sm:$0xff]   ;;  %v2775_v2 = vld [vmem:[#allocation5 + $0x184] ss:$24 sps:$4 sm:$0xff]   ;;  %v2779_v4 = vld [vmem:[#allocation5 + $0x180] ss:$24 sps:$4 sm:$0xff]  }
  0x3f   :  { %1906 = vmatpush1.bf16.msra.mxu1 %v2720_v23  ;;  %1856 = vmatprep.subr.bf16.mxu0 %v2721_v24  ;;  %v2777_v3 = vld [vmem:[#allocation5 + $0x484] ss:$24 sps:$4 sm:$0xff]   ;;  %v2780_v5 = vld [vmem:[#allocation5 + $0x480] ss:$24 sps:$4 sm:$0xff]   ;;  %v62_v9 = vld [vmem:[#allocation2 + $0x40] sm:$0xff]  ;;  %s3213_s30 = scalar_lea.vmem %s2345_s2, 2304 }
  0x40   :  { %1907 = vmatprep.subr.bf16.mxu1 %v2723_v25  ;;  %v56_v8 = vld [vmem:[#allocation2 + $0x10] sm:$0xff]  ;;  %v2783_v10 = vld [vmem:[#allocation5 + $0x754] ss:$24 sps:$4 sm:$0xff]   ;;  %v2781_v14 = vld [vmem:[#allocation5 + $0x750] ss:$24 sps:$4 sm:$0xff]   ;;  %p3214_p1 = scmp.ne.s32.totalorder %s2345_s2, %s3213_s30  ;;  %p3219_p3 = scmp.lt.s32.totalorder %s3213_s30, %s3213_s30 }
  0x41   :  { %v2786_v11 = vld [vmem:[#allocation5 + $0x15c] ss:$24 sps:$4 sm:$0xff]   ;;  %v3287_v13 = vpack.c.bf16 %v62_v9, %v56_v8  ;;  %v2784_v15 = vld [vmem:[#allocation5 + $0x158] ss:$24 sps:$4 sm:$0xff]   ;;  %v2792_v17 = vld [vmem:[#allocation5 + $0x12c] ss:$24 sps:$4 sm:$0xff]  }
  0x42   :  { %1857 = vmatpush1.bf16.msra.mxu0 %v2725_v26  ;;  %v2789_v16 = vld [vmem:[#allocation5 + $0x724] ss:$24 sps:$4 sm:$0xff]   ;;  %v2787_v18 = vld [vmem:[#allocation5 + $0x720] ss:$24 sps:$4 sm:$0xff]   ;;  %v2795_v20 = vld [vmem:[#allocation5 + $0x6f4] ss:$24 sps:$4 sm:$0xff]   ;;  %p3220_p4 = por %p3219_p3, %p3218_p2 }
  0x43   :  { %1908 = vmatpush1.bf16.msra.mxu1 %v2726_v27  ;;  %1858 = vmatprep.subr.bf16.mxu0 %v2727_v28  ;;  %v2790_v19 = vld [vmem:[#allocation5 + $0x128] ss:$24 sps:$4 sm:$0xff]   ;;  %v2798_v21 = vld [vmem:[#allocation5 + $0xfc] ss:$24 sps:$4 sm:$0xff]   ;;  %v2796_v23 = vld [vmem:[#allocation5 + $0xf8] ss:$24 sps:$4 sm:$0xff]  }
  0x44   :  { %1909 = vmatprep.subr.bf16.mxu1 %v2729_v29  ;;  %v2793_v22 = vld [vmem:[#allocation5 + $0x6f0] ss:$24 sps:$4 sm:$0xff]   ;;  %v2801_v24 = vld [vmem:[#allocation5 + $0x6c4] ss:$24 sps:$4 sm:$0xff]   ;;  %v2799_v26 = vld [vmem:[#allocation5 + $0x6c0] ss:$24 sps:$4 sm:$0xff]   ;;  %p3221_p5 = pnand %p3220_p4, %p3214_p1 }
  0x45   :  { %v2804_v25 = vld [vmem:[#allocation5 + $0xcc] ss:$24 sps:$4 sm:$0xff]   ;;  %v2802_v27 = vld [vmem:[#allocation5 + $0xc8] ss:$24 sps:$4 sm:$0xff]   ;;  %v2810_v29 = vld [vmem:[#allocation5 + $0x9c] ss:$24 sps:$4 sm:$0xff]  }
  0x46   :  { %1859 = vmatpush1.bf16.msra.mxu0 %v2731_v30  ;;  %v2807_v28 = vld [vmem:[#allocation5 + $0x694] ss:$24 sps:$4 sm:$0xff]   ;;  %v2805_v30 = vld [vmem:[#allocation5 + $0x690] ss:$24 sps:$4 sm:$0xff]   ;;  %v2825_v48 = vld [vmem:[#allocation5 + $0x604] ss:$24 sps:$4 sm:$0xff]  }
  0x47   :  { %1910 = vmatpush1.bf16.msra.mxu1 %v2732_v31  ;;  %1860 = vmatprep.subr.bf16.mxu0 %v2733_v32  ;;  %v2808_v31 = vld [vmem:[#allocation5 + $0x98] ss:$24 sps:$4 sm:$0xff]   ;;  %v2828_v49 = vld [vmem:[#allocation5 + $0xc] ss:$24 sps:$4 sm:$0xff]   ;;  %v2850_v8 = vld [vmem:[#allocation5 + $0x248] ss:$24 sps:$4 sm:$0xff]  }
  0x48   :  { %1911 = vmatprep.subr.bf16.mxu1 %v2735_v33  ;;  %v67_v32 = vld [vmem:[#allocation2 + $0x68] sm:$0xff]  ;;  %v66_v33 = vld [vmem:[#allocation2 + $0x60] sm:$0xff]  ;;  %v2852_v6 = vld [vmem:[#allocation5 + $0x24c] ss:$24 sps:$4 sm:$0xff]  }
  0x49   :  { %v2817_v46 = vld [vmem:[#allocation5 + $0x630] ss:$24 sps:$4 sm:$0xff]   ;;  %v2847_v7 = vld [vmem:[#allocation5 + $0x840] ss:$24 sps:$4 sm:$0xff]   ;;  %v2855_v9 = vld [vmem:[#allocation5 + $0x814] ss:$24 sps:$4 sm:$0xff]  }
  0x4a   :  { %1861 = vmatpush2.bf16.msra.mxu0 %v2737_v34  ;;  %v2813_v34 = vld [vmem:[#allocation5 + $0x664] ss:$24 sps:$4 sm:$0xff]   ;;  %v2820_v47 = vld [vmem:[#allocation5 + $0x38] ss:$24 sps:$4 sm:$0xff]  }
  0x4b   :  { %1912 = vmatpush2.bf16.msra.mxu1 %v2738_v35  ;;  %1862 = vmatprep.subr.bf16.mxu0 %v2739_v36  ;;  %v2816_v35 = vld [vmem:[#allocation5 + $0x6c] ss:$24 sps:$4 sm:$0xff]   ;;  %v3291_v36 = vpack.c.bf16 %v67_v32, %v67_v32  ;;  %v71_v32 = vld [vmem:[#allocation2 + $0x88] sm:$0xff] }
  0x4c   :  { %1913 = vmatprep.subr.bf16.mxu1 %v2741_v37  ;;  %v2811_v37 = vld [vmem:[#allocation5 + $0x660] ss:$24 sps:$4 sm:$0xff]  }
  0x4e   :  { %1863 = vmatpush2.bf16.msra.mxu0 %v2743_v38  ;;  %v3293_v38 = vpack.c.bf16 %v66_v33, %v66_v33  ;;  %v2877_v33 = vld [vmem:[#allocation5 + $0x458] ss:$24 sps:$4 sm:$0xff]  }
  0x4f   :  { %1914 = vmatpush2.bf16.msra.mxu1 %v2744_v39  ;;  %1864 = vmatprep.subr.bf16.mxu0 %v2745_v40  ;;  %v2814_v39 = vld [vmem:[#allocation5 + $0x68] ss:$24 sps:$4 sm:$0xff]  }
  0x50   :  { %1915 = vmatprep.subr.bf16.mxu1 %v2747_v41  ;;  %v69_v40 = vld [vmem:[#allocation2 + $0x78] sm:$0xff]  ;;  %v68_v41 = vld [vmem:[#allocation2 + $0x70] sm:$0xff] }
  0x52   :  { %1865 = vmatpush2.bf16.msra.mxu0 %v2749_v42  ;;  %v2819_v42 = vld [vmem:[#allocation5 + $0x634] ss:$24 sps:$4 sm:$0xff]  }
  0x53   :  { %1916 = vmatpush2.bf16.msra.mxu1 %v2750_v43  ;;  %1866 = vmatprep.subr.bf16.mxu0 %v2751_v44  ;;  %v3296_v43 = vpack.c.bf16 %v69_v40, %v69_v40  ;;  %v3298_v44 = vpack.c.bf16 %v68_v41, %v68_v41  ;;  %v2883_v40 = vld [vmem:[#allocation5 + $0x428] ss:$24 sps:$4 sm:$0xff]  }
  0x54   :  { %1917 = vmatprep.subr.bf16.mxu1 %v2753_v45  ;;  %v2822_v45 = vld [vmem:[#allocation5 + $0x3c] ss:$24 sps:$4 sm:$0xff]   ;;  %v2886_v41 = vld [vmem:[#allocation5 + $0x728] ss:$24 sps:$4 sm:$0xff]  }
  0x56   :  { %1867 = vmatpush2.bf16.msra.mxu0 %v2755_v50  ;;  %v59_v50 = vld [vmem:[#allocation2 + $0x28] sm:$0xff] }
  0x57   :  { %1918 = vmatpush2.bf16.msra.mxu1 %v2756_v51  ;;  %1868 = vmatprep.subr.bf16.mxu0 %v2757_v52  ;;  %v65_v51 = vld [vmem:[#allocation2 + $0x58] sm:$0xff] }
  0x58   :  { %1919 = vmatprep.subr.bf16.mxu1 %v2759_v55  ;;  %v3303_v52 = vpack.c.bf16 %v65_v51, %v59_v50  ;;  %v2823_v55 = vld [vmem:[#allocation5 + $0x600] ss:$24 sps:$4 sm:$0xff]   ;;  %v2897_v50 = vld [vmem:[#allocation5 + $0x3cc] ss:$24 sps:$4 sm:$0xff]  }
  0x59   :  { %v2900_v51 = vld [vmem:[#allocation5 + $0x6cc] ss:$24 sps:$4 sm:$0xff]  }
  0x5a   :  { %1869 = vmatpush2.bf16.msra.mxu0 %v2761_v56  ;;  %v2826_v56 = vld [vmem:[#allocation5 + $0x8] ss:$24 sps:$4 sm:$0xff]  }
  0x5b   :  { %1920 = vmatpush2.bf16.msra.mxu1 %v2762_v57  ;;  %1870 = vmatprep.subr.bf16.mxu0 %v2763_v58  ;;  %v2831_v57 = vld [vmem:[#allocation5 + $0x8d4] ss:$24 sps:$4 sm:$0xff]  }
  0x5c   :  { %1921 = vmatprep.subr.bf16.mxu1 %v2765_v59  ;;  %v2834_v58 = vld [vmem:[#allocation5 + $0x2dc] ss:$24 sps:$4 sm:$0xff]   ;;  %v2829_v59 = vld [vmem:[#allocation5 + $0x8d0] ss:$24 sps:$4 sm:$0xff]  }
  0x5e   :  { %1871 = vmatpush2.bf16.msra.mxu0 %v2767_v60  ;;  %v2832_v60 = vld [vmem:[#allocation5 + $0x2d8] ss:$24 sps:$4 sm:$0xff]  }
  0x5f   :  { %1922 = vmatpush2.bf16.msra.mxu1 %v2768_v61  ;;  %1872 = vmatprep.subr.bf16.mxu0 %v2769_v62  ;;  %v2837_v61 = vld [vmem:[#allocation5 + $0x8a4] ss:$24 sps:$4 sm:$0xff]  }
  0x60   :  { %1923 = vmatprep.subr.bf16.mxu1 %v2771_v63  ;;  %v2840_v62 = vld [vmem:[#allocation5 + $0x2ac] ss:$24 sps:$4 sm:$0xff]   ;;  %v2835_v63 = vld [vmem:[#allocation5 + $0x8a0] ss:$24 sps:$4 sm:$0xff]  }
  0x62   :  { %1873 = vmatpush2.bf16.msra.mxu0 %v2773_v0  ;;  %v2838_v0 = vld [vmem:[#allocation5 + $0x2a8] ss:$24 sps:$4 sm:$0xff]  }
  0x63   :  { %1924 = vmatpush2.bf16.msra.mxu1 %v2774_v1  ;;  %1874 = vmatprep.subr.bf16.mxu0 %v2775_v2  ;;  %v2843_v1 = vld [vmem:[#allocation5 + $0x874] ss:$24 sps:$4 sm:$0xff]  }
  0x64   :  { %1925 = vmatprep.subr.bf16.mxu1 %v2777_v3  ;;  %v2846_v2 = vld [vmem:[#allocation5 + $0x27c] ss:$24 sps:$4 sm:$0xff]   ;;  %v2841_v3 = vld [vmem:[#allocation5 + $0x870] ss:$24 sps:$4 sm:$0xff]  }
  0x66   :  { %1875 = vmatpush2.bf16.msra.mxu0 %v2779_v4  ;;  %v2844_v4 = vld [vmem:[#allocation5 + $0x278] ss:$24 sps:$4 sm:$0xff]  }
  0x67   :  { %1926 = vmatpush2.bf16.msra.mxu1 %v2780_v5  ;;  %1946 = vmatprep.subr.bf16.mxu0 %v2783_v10  ;;  %v2849_v5 = vld [vmem:[#allocation5 + $0x844] ss:$24 sps:$4 sm:$0xff]  }
  0x68   :  { %1997 = vmatprep.subr.bf16.mxu1 %v2786_v11  ;;  %v2858_v10 = vld [vmem:[#allocation5 + $0x21c] ss:$24 sps:$4 sm:$0xff]   ;;  %v2853_v11 = vld [vmem:[#allocation5 + $0x810] ss:$24 sps:$4 sm:$0xff]  }
  0x69   :  { %1877 = vmatmul.mubr.bf16.vlgmr.msra.gmra.mxu0 %v3285_v12 }
  0x6a   :  { %1928 = vmatmul.mubr.bf16.vlgmr.msra.gmra.mxu1 %v3287_v13  ;;  %1947 = vmatpush1.bf16.msra.mxu0 %v2781_v14  ;;  %v2856_v14 = vld [vmem:[#allocation5 + $0x218] ss:$24 sps:$4 sm:$0xff]  }
  0x6b   :  { %1998 = vmatpush1.bf16.msra.mxu1 %v2784_v15  ;;  %1948 = vmatprep.subr.bf16.mxu0 %v2789_v16  ;;  %v2861_v15 = vld [vmem:[#allocation5 + $0x7e4] ss:$24 sps:$4 sm:$0xff]  }
  0x6c   :  { %1999 = vmatprep.subr.bf16.mxu1 %v2792_v17  ;;  %1886 = vmatprep.mubr.bf16.mxu0 %v3291_v36  ;;  %v2864_v16 = vld [vmem:[#allocation5 + $0x1ec] ss:$24 sps:$4 sm:$0xff]   ;;  %v2859_v17 = vld [vmem:[#allocation5 + $0x7e0] ss:$24 sps:$4 sm:$0xff]  }
  0x6d   :  { %1937 = vmatprep.mubr.bf16.mxu1 %v3296_v43 }
  0x6e   :  { %1949 = vmatpush1.bf16.msra.mxu0 %v2787_v18  ;;  %v2862_v18 = vld [vmem:[#allocation5 + $0x1e8] ss:$24 sps:$4 sm:$0xff]  }
  0x6f   :  { %2000 = vmatpush1.bf16.msra.mxu1 %v2790_v19  ;;  %1950 = vmatprep.subr.bf16.mxu0 %v2795_v20  ;;  %v2867_v19 = vld [vmem:[#allocation5 + $0x7b4] ss:$24 sps:$4 sm:$0xff]  }
  0x70   :  { %2001 = vmatprep.subr.bf16.mxu1 %v2798_v21  ;;  %v2870_v20 = vld [vmem:[#allocation5 + $0x1bc] ss:$24 sps:$4 sm:$0xff]   ;;  %v2865_v21 = vld [vmem:[#allocation5 + $0x7b0] ss:$24 sps:$4 sm:$0xff]  }
  0x71   :  { %1887 = vmatmul.mubr.bf16.gmra.mxu0 %v3293_v38 }
  0x72   :  { %1951 = vmatpush1.bf16.msra.mxu0 %v2793_v22  ;;  %1938 = vmatmul.mubr.bf16.gmra.mxu1 %v3298_v44  ;;  %v2868_v22 = vld [vmem:[#allocation5 + $0x1b8] ss:$24 sps:$4 sm:$0xff]  }
  0x73   :  { %2002 = vmatpush1.bf16.msra.mxu1 %v2796_v23  ;;  %1952 = vmatprep.subr.bf16.mxu0 %v2801_v24  ;;  %v2873_v23 = vld [vmem:[#allocation5 + $0x784] ss:$24 sps:$4 sm:$0xff]  }
  0x74   :  { %2003 = vmatprep.subr.bf16.mxu1 %v2804_v25  ;;  %2029 = vmatprep.mubr.bf16.mxu1 %v3279_v53  ;;  %v2876_v24 = vld [vmem:[#allocation5 + $0x18c] ss:$24 sps:$4 sm:$0xff]   ;;  %v2871_v25 = vld [vmem:[#allocation5 + $0x780] ss:$24 sps:$4 sm:$0xff]  }
  0x75   :  { %1978 = vmatprep.mubr.bf16.mxu0 %v3303_v52 }
  0x76   :  { %1953 = vmatpush1.bf16.msra.mxu0 %v2799_v26  ;;  %v2874_v26 = vld [vmem:[#allocation5 + $0x188] ss:$24 sps:$4 sm:$0xff]  }
  0x77   :  { %2004 = vmatpush1.bf16.msra.mxu1 %v2802_v27  ;;  %1954 = vmatprep.subr.bf16.mxu0 %v2807_v28  ;;  %v58_v27 = vld [vmem:[#allocation2 + $0x20] sm:$0xff]  ;;  %v64_v28 = vld [vmem:[#allocation2 + $0x50] sm:$0xff] }
  0x78   :  { %2005 = vmatprep.subr.bf16.mxu1 %v2810_v29  ;;  %v2879_v29 = vld [vmem:[#allocation5 + $0x45c] ss:$24 sps:$4 sm:$0xff]  }
  0x7a   :  { %1955 = vmatpush1.bf16.msra.mxu0 %v2805_v30  ;;  %v2882_v30 = vld [vmem:[#allocation5 + $0x75c] ss:$24 sps:$4 sm:$0xff]  }
  0x7b   :  { %2006 = vmatpush1.bf16.msra.mxu1 %v2808_v31  ;;  %1956 = vmatprep.subr.bf16.mxu0 %v2813_v34  ;;  %v3307_v31 = vpack.c.bf16 %v64_v28, %v58_v27  ;;  %v2880_v34 = vld [vmem:[#allocation5 + $0x758] ss:$24 sps:$4 sm:$0xff]   ;;  %v2951_v27 = vld [vmem:[#allocation5 + $0x51c] ss:$24 sps:$4 sm:$0xff]  }
  0x7c   :  { %2007 = vmatprep.subr.bf16.mxu1 %v2816_v35  ;;  %v2885_v35 = vld [vmem:[#allocation5 + $0x42c] ss:$24 sps:$4 sm:$0xff]   ;;  %v2954_v28 = vld [vmem:[#allocation5 + $0x81c] ss:$24 sps:$4 sm:$0xff]  }
  0x7e   :  { %1957 = vmatpush1.bf16.msra.mxu0 %v2811_v37  ;;  %v2888_v37 = vld [vmem:[#allocation5 + $0x72c] ss:$24 sps:$4 sm:$0xff]  }
  0x7f   :  { %2008 = vmatpush1.bf16.msra.mxu1 %v2814_v39  ;;  %1958 = vmatprep.subr.bf16.mxu0 %v2819_v42  ;;  %v3309_v39 = vpack.c.bf16 %v71_v32, %v71_v32  ;;  %v70_v42 = vld [vmem:[#allocation2 + $0x80] sm:$0xff]  ;;  %v2957_v32 = vld [vmem:[#allocation5 + $0x4ec] ss:$24 sps:$4 sm:$0xff]  }
  0x80   :  { %2009 = vmatprep.subr.bf16.mxu1 %v2822_v45  ;;  %v2891_v45 = vld [vmem:[#allocation5 + $0x3fc] ss:$24 sps:$4 sm:$0xff]  }
  0x82   :  { %1959 = vmatpush1.bf16.msra.mxu0 %v2817_v46  ;;  %v2894_v46 = vld [vmem:[#allocation5 + $0x6fc] ss:$24 sps:$4 sm:$0xff]  }
  0x83   :  { %2010 = vmatpush1.bf16.msra.mxu1 %v2820_v47  ;;  %1960 = vmatprep.subr.bf16.mxu0 %v2825_v48  ;;  %v3315_v47 = vpack.c.bf16 %v70_v42, %v70_v42  ;;  %v2889_v48 = vld [vmem:[#allocation5 + $0x3f8] ss:$24 sps:$4 sm:$0xff]  }
  0x84   :  { %2011 = vmatprep.subr.bf16.mxu1 %v2828_v49  ;;  %v2892_v49 = vld [vmem:[#allocation5 + $0x6f8] ss:$24 sps:$4 sm:$0xff]  }
  0x85   :  { %v2964_v42 = vld [vmem:[#allocation5 + $0x7b8] ss:$24 sps:$4 sm:$0xff]  }
  0x86   :  { %1961 = vmatpush1.bf16.msra.mxu0 %v2823_v55  ;;  %v2895_v55 = vld [vmem:[#allocation5 + $0x3c8] ss:$24 sps:$4 sm:$0xff]  }
  0x87   :  { %2012 = vmatpush1.bf16.msra.mxu1 %v2826_v56  ;;  %1962 = vmatprep.subr.bf16.mxu0 %v2831_v57  ;;  %v2898_v56 = vld [vmem:[#allocation5 + $0x6c8] ss:$24 sps:$4 sm:$0xff]   ;;  %v2903_v57 = vld [vmem:[#allocation5 + $0x39c] ss:$24 sps:$4 sm:$0xff]  }
  0x88   :  { %2013 = vmatprep.subr.bf16.mxu1 %v2834_v58  ;;  %v2906_v58 = vld [vmem:[#allocation5 + $0x69c] ss:$24 sps:$4 sm:$0xff]  }
  0x8a   :  { %1963 = vmatpush2.bf16.msra.mxu0 %v2829_v59  ;;  %v2901_v59 = vld [vmem:[#allocation5 + $0x398] ss:$24 sps:$4 sm:$0xff]  }
  0x8b   :  { %2014 = vmatpush2.bf16.msra.mxu1 %v2832_v60  ;;  %1964 = vmatprep.subr.bf16.mxu0 %v2837_v61  ;;  %v2904_v60 = vld [vmem:[#allocation5 + $0x698] ss:$24 sps:$4 sm:$0xff]   ;;  %v2909_v61 = vld [vmem:[#allocation5 + $0x36c] ss:$24 sps:$4 sm:$0xff]  }
  0x8c   :  { %2015 = vmatprep.subr.bf16.mxu1 %v2840_v62  ;;  %v2912_v62 = vld [vmem:[#allocation5 + $0x66c] ss:$24 sps:$4 sm:$0xff]  }
  0x8e   :  { %1965 = vmatpush2.bf16.msra.mxu0 %v2835_v63  ;;  %v2907_v63 = vld [vmem:[#allocation5 + $0x368] ss:$24 sps:$4 sm:$0xff]  }
  0x8f   :  { %2016 = vmatpush2.bf16.msra.mxu1 %v2838_v0  ;;  %1966 = vmatprep.subr.bf16.mxu0 %v2843_v1  ;;  %v2910_v0 = vld [vmem:[#allocation5 + $0x668] ss:$24 sps:$4 sm:$0xff]   ;;  %v2915_v1 = vld [vmem:[#allocation5 + $0x33c] ss:$24 sps:$4 sm:$0xff]  }
  0x90   :  { %2017 = vmatprep.subr.bf16.mxu1 %v2846_v2  ;;  %v2918_v2 = vld [vmem:[#allocation5 + $0x63c] ss:$24 sps:$4 sm:$0xff]  }
  0x92   :  { %1967 = vmatpush2.bf16.msra.mxu0 %v2841_v3  ;;  %v2913_v3 = vld [vmem:[#allocation5 + $0x338] ss:$24 sps:$4 sm:$0xff]  }
  0x93   :  { %2018 = vmatpush2.bf16.msra.mxu1 %v2844_v4  ;;  %1968 = vmatprep.subr.bf16.mxu0 %v2849_v5  ;;  %v2916_v4 = vld [vmem:[#allocation5 + $0x638] ss:$24 sps:$4 sm:$0xff]   ;;  %v2921_v5 = vld [vmem:[#allocation5 + $0x30c] ss:$24 sps:$4 sm:$0xff]  }
  0x94   :  { %2019 = vmatprep.subr.bf16.mxu1 %v2852_v6  ;;  %v2924_v6 = vld [vmem:[#allocation5 + $0x60c] ss:$24 sps:$4 sm:$0xff]  }
  0x96   :  { %1969 = vmatpush2.bf16.msra.mxu0 %v2847_v7  ;;  %v2919_v7 = vld [vmem:[#allocation5 + $0x308] ss:$24 sps:$4 sm:$0xff]  }
  0x97   :  { %2020 = vmatpush2.bf16.msra.mxu1 %v2850_v8  ;;  %1970 = vmatprep.subr.bf16.mxu0 %v2855_v9  ;;  %v2922_v8 = vld [vmem:[#allocation5 + $0x608] ss:$24 sps:$4 sm:$0xff]   ;;  %v2927_v9 = vld [vmem:[#allocation5 + $0x5dc] ss:$24 sps:$4 sm:$0xff]  }
  0x98   :  { %2021 = vmatprep.subr.bf16.mxu1 %v2858_v10  ;;  %v2930_v10 = vld [vmem:[#allocation5 + $0x8dc] ss:$24 sps:$4 sm:$0xff]  }
  0x9a   :  { %1971 = vmatpush2.bf16.msra.mxu0 %v2853_v11  ;;  %v2925_v11 = vld [vmem:[#allocation5 + $0x5d8] ss:$24 sps:$4 sm:$0xff]  }
  0x9b   :  { %2022 = vmatpush2.bf16.msra.mxu1 %v2856_v14  ;;  %1972 = vmatprep.subr.bf16.mxu0 %v2861_v15  ;;  %v2928_v14 = vld [vmem:[#allocation5 + $0x8d8] ss:$24 sps:$4 sm:$0xff]   ;;  %v2933_v15 = vld [vmem:[#allocation5 + $0x5ac] ss:$24 sps:$4 sm:$0xff]  }
  0x9c   :  { %2023 = vmatprep.subr.bf16.mxu1 %v2864_v16  ;;  %v2936_v16 = vld [vmem:[#allocation5 + $0x8ac] ss:$24 sps:$4 sm:$0xff]  }
  0x9e   :  { %1973 = vmatpush2.bf16.msra.mxu0 %v2859_v17  ;;  %v2931_v17 = vld [vmem:[#allocation5 + $0x5a8] ss:$24 sps:$4 sm:$0xff]  }
  0x9f   :  { %2024 = vmatpush2.bf16.msra.mxu1 %v2862_v18  ;;  %1974 = vmatprep.subr.bf16.mxu0 %v2867_v19  ;;  %v2934_v18 = vld [vmem:[#allocation5 + $0x8a8] ss:$24 sps:$4 sm:$0xff]   ;;  %v2939_v19 = vld [vmem:[#allocation5 + $0x57c] ss:$24 sps:$4 sm:$0xff]  }
  0xa0   :  { %2025 = vmatprep.subr.bf16.mxu1 %v2870_v20  ;;  %v2942_v20 = vld [vmem:[#allocation5 + $0x87c] ss:$24 sps:$4 sm:$0xff]  }
  0xa2   :  { %1975 = vmatpush2.bf16.msra.mxu0 %v2865_v21  ;;  %v2937_v21 = vld [vmem:[#allocation5 + $0x578] ss:$24 sps:$4 sm:$0xff]  }
  0xa3   :  { %2026 = vmatpush2.bf16.msra.mxu1 %v2868_v22  ;;  %1976 = vmatprep.subr.bf16.mxu0 %v2873_v23  ;;  %v2940_v22 = vld [vmem:[#allocation5 + $0x878] ss:$24 sps:$4 sm:$0xff]   ;;  %v2945_v23 = vld [vmem:[#allocation5 + $0x54c] ss:$24 sps:$4 sm:$0xff]  }
  0xa4   :  { %2027 = vmatprep.subr.bf16.mxu1 %v2876_v24  ;;  %v2948_v24 = vld [vmem:[#allocation5 + $0x84c] ss:$24 sps:$4 sm:$0xff]  }
  0xa6   :  { %1977 = vmatpush2.bf16.msra.mxu0 %v2871_v25  ;;  %v2943_v25 = vld [vmem:[#allocation5 + $0x548] ss:$24 sps:$4 sm:$0xff]  }
  0xa7   :  { %2028 = vmatpush2.bf16.msra.mxu1 %v2874_v26  ;;  %2048 = vmatprep.subr.bf16.mxu0 %v2879_v29  ;;  %v2946_v26 = vld [vmem:[#allocation5 + $0x848] ss:$24 sps:$4 sm:$0xff]   ;;  %v2949_v29 = vld [vmem:[#allocation5 + $0x518] ss:$24 sps:$4 sm:$0xff]  }
  0xa8   :  { %2099 = vmatprep.subr.bf16.mxu1 %v2882_v30  ;;  %v2952_v30 = vld [vmem:[#allocation5 + $0x818] ss:$24 sps:$4 sm:$0xff]  }
  0xa9   :  { %1979 = vmatmul.mubr.bf16.vlgmr.msra.gmra.mxu0 %v3307_v31 }
  0xaa   :  { %2030 = vmatmul.mubr.bf16.vlgmr.msra.gmra.mxu1 %v3285_v12  ;;  %2049 = vmatpush1.bf16.msra.mxu0 %v2877_v33  ;;  %v2960_v33 = vld [vmem:[#allocation5 + $0x7ec] ss:$24 sps:$4 sm:$0xff]  }
  0xab   :  { %2100 = vmatpush1.bf16.msra.mxu1 %v2880_v34  ;;  %2050 = vmatprep.subr.bf16.mxu0 %v2885_v35  ;;  %v2955_v34 = vld [vmem:[#allocation5 + $0x4e8] ss:$24 sps:$4 sm:$0xff]  }
  0xac   :  { %2101 = vmatprep.subr.bf16.mxu1 %v2888_v37  ;;  %1988 = vmatprep.mubr.bf16.mxu0 %v3309_v39  ;;  %v2958_v35 = vld [vmem:[#allocation5 + $0x7e8] ss:$24 sps:$4 sm:$0xff]   ;;  %v2963_v37 = vld [vmem:[#allocation5 + $0x4bc] ss:$24 sps:$4 sm:$0xff]  }
  0xad   :  { %2039 = vmatprep.mubr.bf16.mxu1 %v3291_v36 }
  0xae   :  { %2051 = vmatpush1.bf16.msra.mxu0 %v2883_v40  ;;  %v2966_v40 = vld [vmem:[#allocation5 + $0x7bc] ss:$24 sps:$4 sm:$0xff]  }
  0xaf   :  { %2102 = vmatpush1.bf16.msra.mxu1 %v2886_v41  ;;  %2052 = vmatprep.subr.bf16.mxu0 %v2891_v45  ;;  %v2961_v41 = vld [vmem:[#allocation5 + $0x4b8] ss:$24 sps:$4 sm:$0xff]   ;;  %v2969_v45 = vld [vmem:[#allocation5 + $0x48c] ss:$24 sps:$4 sm:$0xff]  }
  0xb0   :  { %2103 = vmatprep.subr.bf16.mxu1 %v2894_v46  ;;  %v2972_v46 = vld [vmem:[#allocation5 + $0x78c] ss:$24 sps:$4 sm:$0xff]  }
  0xb1   :  { %1989 = vmatmul.mubr.bf16.gmra.mxu0 %v3315_v47 }
  0xb2   :  { %2040 = vmatmul.mubr.bf16.gmra.mxu1 %v3293_v38  ;;  %2053 = vmatpush1.bf16.msra.mxu0 %v2889_v48  ;;  %v2967_v48 = vld [vmem:[#allocation5 + $0x488] ss:$24 sps:$4 sm:$0xff]  }
  0xb3   :  { %2104 = vmatpush1.bf16.msra.mxu1 %v2892_v49  ;;  %2054 = vmatprep.subr.bf16.mxu0 %v2897_v50  ;;  %v2970_v49 = vld [vmem:[#allocation5 + $0x788] ss:$24 sps:$4 sm:$0xff]   ;;  %v2975_v50 = vld [vmem:[#allocation5 + $0x164] ss:$24 sps:$4 sm:$0xff]  }
  0xb4   :  { %2105 = vmatprep.subr.bf16.mxu1 %v2900_v51  ;;  %2080 = vmatprep.mubr.bf16.mxu0 %v3281_v54  ;;  %v2978_v51 = vld [vmem:[#allocation5 + $0x464] ss:$24 sps:$4 sm:$0xff]  }
  0xb5   :  { %2131 = vmatprep.mubr.bf16.mxu1 %v3303_v52 }
  0xb6   :  { %2055 = vmatpush1.bf16.msra.mxu0 %v2895_v55  ;;  %v2973_v55 = vld [vmem:[#allocation5 + $0x160] ss:$24 sps:$4 sm:$0xff]  }
  0xb7   :  { %2106 = vmatpush1.bf16.msra.mxu1 %v2898_v56  ;;  %2056 = vmatprep.subr.bf16.mxu0 %v2903_v57  ;;  %v2976_v56 = vld [vmem:[#allocation5 + $0x460] ss:$24 sps:$4 sm:$0xff]   ;;  %v2981_v57 = vld [vmem:[#allocation5 + $0x134] ss:$24 sps:$4 sm:$0xff]  }
  0xb8   :  { %2107 = vmatprep.subr.bf16.mxu1 %v2906_v58  ;;  %v2984_v58 = vld [vmem:[#allocation5 + $0x434] ss:$24 sps:$4 sm:$0xff]  }
  0xba   :  { %2057 = vmatpush1.bf16.msra.mxu0 %v2901_v59  ;;  %v2979_v59 = vld [vmem:[#allocation5 + $0x130] ss:$24 sps:$4 sm:$0xff]  }
  0xbb   :  { %2108 = vmatpush1.bf16.msra.mxu1 %v2904_v60  ;;  %2058 = vmatprep.subr.bf16.mxu0 %v2909_v61  ;;  %v2982_v60 = vld [vmem:[#allocation5 + $0x430] ss:$24 sps:$4 sm:$0xff]   ;;  %v2987_v61 = vld [vmem:[#allocation5 + $0x104] ss:$24 sps:$4 sm:$0xff]  }
  0xbc   :  { %2109 = vmatprep.subr.bf16.mxu1 %v2912_v62  ;;  %v2990_v62 = vld [vmem:[#allocation5 + $0x404] ss:$24 sps:$4 sm:$0xff]  }
  0xbe   :  { %2059 = vmatpush1.bf16.msra.mxu0 %v2907_v63  ;;  %v2985_v63 = vld [vmem:[#allocation5 + $0x100] ss:$24 sps:$4 sm:$0xff]  }
  0xbf   :  { %2110 = vmatpush1.bf16.msra.mxu1 %v2910_v0  ;;  %2060 = vmatprep.subr.bf16.mxu0 %v2915_v1  ;;  %v2988_v0 = vld [vmem:[#allocation5 + $0x400] ss:$24 sps:$4 sm:$0xff]   ;;  %v2993_v1 = vld [vmem:[#allocation5 + $0xd4] ss:$24 sps:$4 sm:$0xff]  }
  0xc0   :  { %2111 = vmatprep.subr.bf16.mxu1 %v2918_v2  ;;  %v2996_v2 = vld [vmem:[#allocation5 + $0x3d4] ss:$24 sps:$4 sm:$0xff]  }
  0xc2   :  { %2061 = vmatpush1.bf16.msra.mxu0 %v2913_v3  ;;  %v2991_v3 = vld [vmem:[#allocation5 + $0xd0] ss:$24 sps:$4 sm:$0xff]  }
  0xc3   :  { %2112 = vmatpush1.bf16.msra.mxu1 %v2916_v4  ;;  %2062 = vmatprep.subr.bf16.mxu0 %v2921_v5  ;;  %v2994_v4 = vld [vmem:[#allocation5 + $0x3d0] ss:$24 sps:$4 sm:$0xff]   ;;  %v2999_v5 = vld [vmem:[#allocation5 + $0xa4] ss:$24 sps:$4 sm:$0xff]  }
  0xc4   :  { %2113 = vmatprep.subr.bf16.mxu1 %v2924_v6  ;;  %v3002_v6 = vld [vmem:[#allocation5 + $0x3a4] ss:$24 sps:$4 sm:$0xff]  }
  0xc6   :  { %2063 = vmatpush1.bf16.msra.mxu0 %v2919_v7  ;;  %v2997_v7 = vld [vmem:[#allocation5 + $0xa0] ss:$24 sps:$4 sm:$0xff]  }
  0xc7   :  { %2114 = vmatpush1.bf16.msra.mxu1 %v2922_v8  ;;  %2064 = vmatprep.subr.bf16.mxu0 %v2927_v9  ;;  %v3000_v8 = vld [vmem:[#allocation5 + $0x3a0] ss:$24 sps:$4 sm:$0xff]   ;;  %v3005_v9 = vld [vmem:[#allocation5 + $0x74] ss:$24 sps:$4 sm:$0xff]  }
  0xc8   :  { %2115 = vmatprep.subr.bf16.mxu1 %v2930_v10  ;;  %v3008_v10 = vld [vmem:[#allocation5 + $0x374] ss:$24 sps:$4 sm:$0xff]  }
  0xca   :  { %2065 = vmatpush2.bf16.msra.mxu0 %v2925_v11  ;;  %v3003_v11 = vld [vmem:[#allocation5 + $0x70] ss:$24 sps:$4 sm:$0xff]  }
  0xcb   :  { %2116 = vmatpush2.bf16.msra.mxu1 %v2928_v14  ;;  %2066 = vmatprep.subr.bf16.mxu0 %v2933_v15  ;;  %v3006_v14 = vld [vmem:[#allocation5 + $0x370] ss:$24 sps:$4 sm:$0xff]   ;;  %v3011_v15 = vld [vmem:[#allocation5 + $0x44] ss:$24 sps:$4 sm:$0xff]  }
  0xcc   :  { %2117 = vmatprep.subr.bf16.mxu1 %v2936_v16  ;;  %v3014_v16 = vld [vmem:[#allocation5 + $0x344] ss:$24 sps:$4 sm:$0xff]  }
  0xce   :  { %2067 = vmatpush2.bf16.msra.mxu0 %v2931_v17  ;;  %v3017_v17 = vld [vmem:[#allocation5 + $0x14] ss:$24 sps:$4 sm:$0xff]  }
  0xcf   :  { %2118 = vmatpush2.bf16.msra.mxu1 %v2934_v18  ;;  %2068 = vmatprep.subr.bf16.mxu0 %v2939_v19  ;;  %v3020_v18 = vld [vmem:[#allocation5 + $0x314] ss:$24 sps:$4 sm:$0xff]   ;;  %v3015_v19 = vld [vmem:[#allocation5 + $0x10] ss:$24 sps:$4 sm:$0xff]  }
  0xd0   :  { %2119 = vmatprep.subr.bf16.mxu1 %v2942_v20  ;;  %v3018_v20 = vld [vmem:[#allocation5 + $0x310] ss:$24 sps:$4 sm:$0xff]  }
  0xd2   :  { %2069 = vmatpush2.bf16.msra.mxu0 %v2937_v21  ;;  %v3023_v21 = vld [vmem:[#allocation5 + $0x2e4] ss:$24 sps:$4 sm:$0xff]  }
  0xd3   :  { %2120 = vmatpush2.bf16.msra.mxu1 %v2940_v22  ;;  %2070 = vmatprep.subr.bf16.mxu0 %v2945_v23  ;;  %v3026_v22 = vld [vmem:[#allocation5 + $0x5e4] ss:$24 sps:$4 sm:$0xff]   ;;  %v3021_v23 = vld [vmem:[#allocation5 + $0x2e0] ss:$24 sps:$4 sm:$0xff]  }
  0xd4   :  { %2121 = vmatprep.subr.bf16.mxu1 %v2948_v24  ;;  %v3024_v24 = vld [vmem:[#allocation5 + $0x5e0] ss:$24 sps:$4 sm:$0xff]  }
  0xd6   :  { %2071 = vmatpush2.bf16.msra.mxu0 %v2943_v25  ;;  %v3029_v25 = vld [vmem:[#allocation5 + $0x2b4] ss:$24 sps:$4 sm:$0xff]  }
  0xd7   :  { %2122 = vmatpush2.bf16.msra.mxu1 %v2946_v26  ;;  %2072 = vmatprep.subr.bf16.mxu0 %v2951_v27  ;;  %v3032_v26 = vld [vmem:[#allocation5 + $0x5b4] ss:$24 sps:$4 sm:$0xff]   ;;  %v3027_v27 = vld [vmem:[#allocation5 + $0x2b0] ss:$24 sps:$4 sm:$0xff]  }
  0xd8   :  { %2123 = vmatprep.subr.bf16.mxu1 %v2954_v28  ;;  %v3030_v28 = vld [vmem:[#allocation5 + $0x5b0] ss:$24 sps:$4 sm:$0xff]  }
  0xda   :  { %2073 = vmatpush2.bf16.msra.mxu0 %v2949_v29  ;;  %v3035_v29 = vld [vmem:[#allocation5 + $0x284] ss:$24 sps:$4 sm:$0xff]  }
  0xdb   :  { %2124 = vmatpush2.bf16.msra.mxu1 %v2952_v30  ;;  %2074 = vmatprep.subr.bf16.mxu0 %v2957_v32  ;;  %v3038_v30 = vld [vmem:[#allocation5 + $0x584] ss:$24 sps:$4 sm:$0xff]   ;;  %v3033_v32 = vld [vmem:[#allocation5 + $0x280] ss:$24 sps:$4 sm:$0xff]  }
  0xdc   :  { %2125 = vmatprep.subr.bf16.mxu1 %v2960_v33  ;;  %v3036_v33 = vld [vmem:[#allocation5 + $0x580] ss:$24 sps:$4 sm:$0xff]  }
  0xde   :  { %2075 = vmatpush2.bf16.msra.mxu0 %v2955_v34  ;;  %v3041_v34 = vld [vmem:[#allocation5 + $0x254] ss:$24 sps:$4 sm:$0xff]  }
  0xdf   :  { %2126 = vmatpush2.bf16.msra.mxu1 %v2958_v35  ;;  %2076 = vmatprep.subr.bf16.mxu0 %v2963_v37  ;;  %v3044_v35 = vld [vmem:[#allocation5 + $0x554] ss:$24 sps:$4 sm:$0xff]   ;;  %v3039_v37 = vld [vmem:[#allocation5 + $0x250] ss:$24 sps:$4 sm:$0xff]  }
  0xe0   :  { %2127 = vmatprep.subr.bf16.mxu1 %v2966_v40  ;;  %v3042_v40 = vld [vmem:[#allocation5 + $0x550] ss:$24 sps:$4 sm:$0xff]  }
  0xe2   :  { %2077 = vmatpush2.bf16.msra.mxu0 %v2961_v41  ;;  %v3047_v41 = vld [vmem:[#allocation5 + $0x224] ss:$24 sps:$4 sm:$0xff]  }
  0xe3   :  { %2128 = vmatpush2.bf16.msra.mxu1 %v2964_v42  ;;  %2078 = vmatprep.subr.bf16.mxu0 %v2969_v45  ;;  %v3050_v42 = vld [vmem:[#allocation5 + $0x524] ss:$24 sps:$4 sm:$0xff]   ;;  %v3045_v45 = vld [vmem:[#allocation5 + $0x220] ss:$24 sps:$4 sm:$0xff]  }
  0xe4   :  { %2129 = vmatprep.subr.bf16.mxu1 %v2972_v46  ;;  %v3048_v46 = vld [vmem:[#allocation5 + $0x520] ss:$24 sps:$4 sm:$0xff]  }
  0xe6   :  { %2079 = vmatpush2.bf16.msra.mxu0 %v2967_v48  ;;  %v3053_v48 = vld [vmem:[#allocation5 + $0x1f4] ss:$24 sps:$4 sm:$0xff]  }
  0xe7   :  { %2130 = vmatpush2.bf16.msra.mxu1 %v2970_v49  ;;  %2150 = vmatprep.subr.bf16.mxu0 %v2975_v50  ;;  %v3056_v49 = vld [vmem:[#allocation5 + $0x4f4] ss:$24 sps:$4 sm:$0xff]   ;;  %v3051_v50 = vld [vmem:[#allocation5 + $0x1f0] ss:$24 sps:$4 sm:$0xff]  }
  0xe8   :  { %2201 = vmatprep.subr.bf16.mxu1 %v2978_v51  ;;  %v3054_v51 = vld [vmem:[#allocation5 + $0x4f0] ss:$24 sps:$4 sm:$0xff]  }
  0xe9   :  { %2081 = vmatmul.mubr.bf16.vlgmr.msra.gmra.mxu0 %v3287_v13 }
  0xea   :  { %2132 = vmatmul.mubr.bf16.vlgmr.msra.gmra.mxu1 %v3307_v31  ;;  %2151 = vmatpush1.bf16.msra.mxu0 %v2973_v55  ;;  %v3059_v55 = vld [vmem:[#allocation5 + $0x1c4] ss:$24 sps:$4 sm:$0xff]  }
  0xeb   :  { %2202 = vmatpush1.bf16.msra.mxu1 %v2976_v56  ;;  %2152 = vmatprep.subr.bf16.mxu0 %v2981_v57  ;;  %v3062_v56 = vld [vmem:[#allocation5 + $0x4c4] ss:$24 sps:$4 sm:$0xff]   ;;  %v3057_v57 = vld [vmem:[#allocation5 + $0x1c0] ss:$24 sps:$4 sm:$0xff]  }
  0xec   :  { %2203 = vmatprep.subr.bf16.mxu1 %v2984_v58  ;;  %2090 = vmatprep.mubr.bf16.mxu0 %v3296_v43  ;;  %v3060_v58 = vld [vmem:[#allocation5 + $0x4c0] ss:$24 sps:$4 sm:$0xff]  }
  0xed   :  { %2141 = vmatprep.mubr.bf16.mxu1 %v3309_v39 }
  0xee   :  { %2153 = vmatpush1.bf16.msra.mxu0 %v2979_v59  ;;  %v3065_v59 = vld [vmem:[#allocation5 + $0x194] ss:$24 sps:$4 sm:$0xff]  }
  0xef   :  { %2204 = vmatpush1.bf16.msra.mxu1 %v2982_v60  ;;  %2154 = vmatprep.subr.bf16.mxu0 %v2987_v61  ;;  %v3068_v60 = vld [vmem:[#allocation5 + $0x494] ss:$24 sps:$4 sm:$0xff]   ;;  %v3063_v61 = vld [vmem:[#allocation5 + $0x190] ss:$24 sps:$4 sm:$0xff]  }
  0xf0   :  { %2205 = vmatprep.subr.bf16.mxu1 %v2990_v62  ;;  %v3066_v62 = vld [vmem:[#allocation5 + $0x490] ss:$24 sps:$4 sm:$0xff]  }
  0xf1   :  { %2091 = vmatmul.mubr.bf16.gmra.mxu0 %v3298_v44 }
  0xf2   :  { %2142 = vmatmul.mubr.bf16.gmra.mxu1 %v3315_v47  ;;  %2155 = vmatpush1.bf16.msra.mxu0 %v2985_v63  ;;  %v3071_v63 = vld [vmem:[#allocation5 + $0x764] ss:$24 sps:$4 sm:$0xff]  }
  0xf3   :  { %2206 = vmatpush1.bf16.msra.mxu1 %v2988_v0  ;;  %2156 = vmatprep.subr.bf16.mxu0 %v2993_v1  ;;  %v3069_v0 = vld [vmem:[#allocation5 + $0x760] ss:$24 sps:$4 sm:$0xff]   ;;  %v3074_v1 = vld [vmem:[#allocation5 + $0x734] ss:$24 sps:$4 sm:$0xff]  }
  0xf4   :  { %2207 = vmatprep.subr.bf16.mxu1 %v2996_v2  ;;  %2182 = vmatprep.mubr.bf16.mxu0 %v3279_v53  ;;  %v3009_v53 = vld [vmem:[#allocation5 + $0x40] ss:$24 sps:$4 sm:$0xff]   ;;  %v3072_v2 = vld [vmem:[#allocation5 + $0x730] ss:$24 sps:$4 sm:$0xff]  }
  0xf5   :  { %2233 = vmatprep.mubr.bf16.mxu1 %v3281_v54  ;;  %v3012_v54 = vld [vmem:[#allocation5 + $0x340] ss:$24 sps:$4 sm:$0xff]  }
  0xf6   :  { %2157 = vmatpush1.bf16.msra.mxu0 %v2991_v3  ;;  %v3077_v3 = vld [vmem:[#allocation5 + $0x704] ss:$24 sps:$4 sm:$0xff]  }
  0xf7   :  { %2208 = vmatpush1.bf16.msra.mxu1 %v2994_v4  ;;  %2158 = vmatprep.subr.bf16.mxu0 %v2999_v5  ;;  %v3075_v5 = vld [vmem:[#allocation5 + $0x700] ss:$24 sps:$4 sm:$0xff]  }
  0xf8   :  { %2209 = vmatprep.subr.bf16.mxu1 %v3002_v6 }
  0xfa   :  { %2159 = vmatpush1.bf16.msra.mxu0 %v2997_v7  ;;  %v3083_v7 = vld [vmem:[#allocation5 + $0x6a4] ss:$24 sps:$4 sm:$0xff]  }
  0xfb   :  { %2210 = vmatpush1.bf16.msra.mxu1 %v3000_v8  ;;  %2160 = vmatprep.subr.bf16.mxu0 %v3005_v9  ;;  %v3086_v9 = vld [vmem:[#allocation5 + $0x674] ss:$24 sps:$4 sm:$0xff]  }
  0xfc   :  { %2211 = vmatprep.subr.bf16.mxu1 %v3008_v10 }
  0xfe   :  { %2161 = vmatpush1.bf16.msra.mxu0 %v3003_v11  ;;  %v3084_v11 = vld [vmem:[#allocation5 + $0x670] ss:$24 sps:$4 sm:$0xff]  }
  0xff   :  { %2212 = vmatpush1.bf16.msra.mxu1 %v3006_v14  ;;  %2162 = vmatprep.subr.bf16.mxu0 %v3011_v15 }
 0x100   :  { %2213 = vmatprep.subr.bf16.mxu1 %v3014_v16  ;;  %v3087_v16 = vld [vmem:[#allocation5 + $0x640] ss:$24 sps:$4 sm:$0xff]  }
 0x102   :  { %2163 = vmatpush1.bf16.msra.mxu0 %v3009_v53 }
 0x103   :  { %2214 = vmatpush1.bf16.msra.mxu1 %v3012_v54  ;;  %2164 = vmatprep.subr.bf16.mxu0 %v3017_v17  ;;  %v3092_v54 = vld [vmem:[#allocation5 + $0x614] ss:$24 sps:$4 sm:$0xff]  }
 0x104   :  { %2215 = vmatprep.subr.bf16.mxu1 %v3020_v18 }
 0x106   :  { %2165 = vmatpush1.bf16.msra.mxu0 %v3015_v19 }
 0x107   :  { %2216 = vmatpush1.bf16.msra.mxu1 %v3018_v20  ;;  %2166 = vmatprep.subr.bf16.mxu0 %v3023_v21  ;;  %v3090_v20 = vld [vmem:[#allocation5 + $0x610] ss:$24 sps:$4 sm:$0xff]  }
 0x108   :  { %2217 = vmatprep.subr.bf16.mxu1 %v3026_v22  ;;  %v3095_v22 = vld [vmem:[#allocation5 + $0x8e4] ss:$24 sps:$4 sm:$0xff]  }
 0x10a   :  { %2167 = vmatpush2.bf16.msra.mxu0 %v3021_v23 }
 0x10b   :  { %2218 = vmatpush2.bf16.msra.mxu1 %v3024_v24  ;;  %2168 = vmatprep.subr.bf16.mxu0 %v3029_v25  ;;  %v3093_v24 = vld [vmem:[#allocation5 + $0x8e0] ss:$24 sps:$4 sm:$0xff]   ;;  %v3098_v25 = vld [vmem:[#allocation5 + $0x8b4] ss:$24 sps:$4 sm:$0xff]  }
 0x10c   :  { %2219 = vmatprep.subr.bf16.mxu1 %v3032_v26  ;;  %v3096_v26 = vld [vmem:[#allocation5 + $0x8b0] ss:$24 sps:$4 sm:$0xff]  }
 0x10e   :  { %2169 = vmatpush2.bf16.msra.mxu0 %v3027_v27  ;;  %v3101_v27 = vld [vmem:[#allocation5 + $0x884] ss:$24 sps:$4 sm:$0xff]  }
 0x10f   :  { %2220 = vmatpush2.bf16.msra.mxu1 %v3030_v28  ;;  %2170 = vmatprep.subr.bf16.mxu0 %v3035_v29  ;;  %v3099_v28 = vld [vmem:[#allocation5 + $0x880] ss:$24 sps:$4 sm:$0xff]   ;;  %v3104_v29 = vld [vmem:[#allocation5 + $0x854] ss:$24 sps:$4 sm:$0xff]  }
 0x110   :  { %2221 = vmatprep.subr.bf16.mxu1 %v3038_v30  ;;  %v3102_v30 = vld [vmem:[#allocation5 + $0x850] ss:$24 sps:$4 sm:$0xff]  }
 0x112   :  { %2171 = vmatpush2.bf16.msra.mxu0 %v3033_v32  ;;  %v3107_v32 = vld [vmem:[#allocation5 + $0x824] ss:$24 sps:$4 sm:$0xff]  }
 0x113   :  { %2222 = vmatpush2.bf16.msra.mxu1 %v3036_v33  ;;  %2172 = vmatprep.subr.bf16.mxu0 %v3041_v34  ;;  %v374_v33 = vlaneseq  ;;  %v3105_v34 = vld [vmem:[#allocation5 + $0x820] ss:$24 sps:$4 sm:$0xff]  }
 0x114   :  { %2223 = vmatprep.subr.bf16.mxu1 %v3044_v35  ;;  %v3110_v35 = vld [vmem:[#allocation5 + $0x7f4] ss:$24 sps:$4 sm:$0xff]  }
 0x116   :  { %2173 = vmatpush2.bf16.msra.mxu0 %v3039_v37  ;;  %v3361_v37 = vshrl.u32 %v374_v33, 7 }
 0x117   :  { %2224 = vmatpush2.bf16.msra.mxu1 %v3042_v40  ;;  %2174 = vmatprep.subr.bf16.mxu0 %v3047_v41  ;;  %v3108_v40 = vld [vmem:[#allocation5 + $0x7f0] ss:$24 sps:$4 sm:$0xff]   ;;  %v3113_v41 = vld [vmem:[#allocation5 + $0x7c4] ss:$24 sps:$4 sm:$0xff]  }
 0x118   :  { %2225 = vmatprep.subr.bf16.mxu1 %v3050_v42  ;;  %v376_v42 = vsub.s32 0, %v3361_v37 }
 0x11a   :  { %2175 = vmatpush2.bf16.msra.mxu0 %v3045_v45  ;;  %v3364_v45 = vld [vmem:[#allocation7] sm:$0x3f] }
 0x11b   :  { %2226 = vmatpush2.bf16.msra.mxu1 %v3048_v46  ;;  %2176 = vmatprep.subr.bf16.mxu0 %v3053_v48  ;;  %v380_v46 = vsub.s32 1, %v3361_v37  ;;  %v3111_v48 = vld [vmem:[#allocation5 + $0x7c0] ss:$24 sps:$4 sm:$0xff]  }
 0x11c   :  { %2227 = vmatprep.subr.bf16.mxu1 %v3056_v49  ;;  %v3116_v49 = vld [vmem:[#allocation5 + $0x794] ss:$24 sps:$4 sm:$0xff]  }
 0x11e   :  { %2177 = vmatpush2.bf16.msra.mxu0 %v3051_v50  ;;  %v377_v50 = vrot.slane %v3364_v45, %v376_v42 }
 0x11f   :  { %2228 = vmatpush2.bf16.msra.mxu1 %v3054_v51  ;;  %2178 = vmatprep.subr.bf16.mxu0 %v3059_v55  ;;  %v381_v51 = vrot.slane %v3364_v45, %v380_v46  ;;  %v3114_v55 = vld [vmem:[#allocation5 + $0x790] ss:$24 sps:$4 sm:$0xff]  }
 0x120   :  { %2229 = vmatprep.subr.bf16.mxu1 %v3062_v56 }
 0x122   :  { %2179 = vmatpush2.bf16.msra.mxu0 %v3057_v57 }
 0x123   :  { %2230 = vmatpush2.bf16.msra.mxu1 %v3060_v58  ;;  %2180 = vmatprep.subr.bf16.mxu0 %v3065_v59 }
 0x124   :  { %2231 = vmatprep.subr.bf16.mxu1 %v3068_v60 }
 0x126   :  { %2181 = vmatpush2.bf16.msra.mxu0 %v3063_v61 }
 0x127   :  { %2232 = vmatpush2.bf16.msra.mxu1 %v3066_v62  ;;  %2252 = vmatprep.subr.bf16.mxu0 %v3071_v63 }
 0x128   :  { %2645 = vmatprep.subr.bf16.mxu1 %v3071_v63 }
 0x129   :  { %2183 = vmatmul.mubr.bf16.vlgmr.msra.gmra.mxu0 %v3285_v12  ;;  %v3333_v4 = vpop.f32.mrf.mxu0  ;;  %v3080_v12 = vld [vmem:[#allocation5 + $0x6d4] ss:$24 sps:$4 sm:$0xff]  }
 0x12a   :  { %2234 = vmatmul.mubr.bf16.vlgmr.msra.gmra.mxu1 %v3287_v13  ;;  %2253 = vmatpush1.bf16.msra.mxu0 %v3069_v0  ;;  %v3335_v6 = vpop.f32.mrf.mxu1  ;;  %v1879_v56 = vadd.f32 %v3333_v4, %v377_v50 }
 0x12b   :  { %2661 = vmatpush1.bf16.msra.mxu1 %v3069_v0  ;;  %2254 = vmatprep.subr.bf16.mxu0 %v3074_v1  ;;  %v3339_v13 = vpop.f32.mrf.mxu0 }
 0x12c   :  { %2646 = vmatprep.subr.bf16.mxu1 %v3074_v1  ;;  %2192 = vmatprep.mubr.bf16.mxu0 %v3291_v36  ;;  %v3078_v36 = vld [vmem:[#allocation5 + $0x6d0] ss:$24 sps:$4 sm:$0xff]   ;;  %v1881_v57 = vadd.f32 %v3339_v13, %v381_v51  ;;  %v1930_v58 = vadd.f32 %v3335_v6, %v1879_v56 }
 0x12d   :  { %2243 = vmatprep.mubr.bf16.mxu1 %v3296_v43  ;;  %v3341_v43 = vpop.f32.mrf.mxu1  ;;  %v3345_v8 = vpop.f32.mrf.mxu0 }
 0x12e   :  { %2255 = vmatpush1.bf16.msra.mxu0 %v3072_v2  ;;  %v1883_v59 = vadd.f32 %v3345_v8, %v377_v50  ;;  %v1932_v62 = vadd.f32 %v3341_v43, %v1881_v57 }
 0x12f   :  { %2662 = vmatpush1.bf16.msra.mxu1 %v3072_v2  ;;  %2256 = vmatprep.subr.bf16.mxu0 %v3077_v3  ;;  %v3349_v10 = vpop.f32.mrf.mxu0 }
 0x130   :  { %2647 = vmatprep.subr.bf16.mxu1 %v3077_v3  ;;  %v1885_v63 = vadd.f32 %v3349_v10, %v381_v51 }
 0x131   :  { %2193 = vmatmul.mubr.bf16.gmra.mxu0 %v3293_v38  ;;  %v3081_v38 = vld [vmem:[#allocation5 + $0x6a0] ss:$24 sps:$4 sm:$0xff]  }
 0x132   :  { %2244 = vmatmul.mubr.bf16.gmra.mxu1 %v3298_v44  ;;  %2257 = vmatpush1.bf16.msra.mxu0 %v3075_v5  ;;  %v3347_v44 = vpop.f32.mrf.mxu1 }
 0x133   :  { %2663 = vmatpush1.bf16.msra.mxu1 %v3075_v5  ;;  %2258 = vmatprep.subr.bf16.mxu0 %v3080_v12  ;;  %v1934_v3 = vadd.f32 %v3347_v44, %v1883_v59 }
 0x134   :  { %2648 = vmatprep.subr.bf16.mxu1 %v3080_v12  ;;  %2284 = vmatprep.mubr.bf16.mxu0 %v3303_v52  ;;  %v3351_v14 = vpop.f32.mrf.mxu1  ;;  %v3089_v52 = vld [vmem:[#allocation5 + $0x644] ss:$24 sps:$4 sm:$0xff]  }
 0x135   :  { %2294 = vmatprep.mubr.bf16.mxu1 %v3309_v39  ;;  %v3353_v39 = vpop.f32.mrf.mxu0  ;;  %v1936_v13 = vadd.f32 %v3351_v14, %v1885_v63 }
 0x136   :  { %2259 = vmatpush1.bf16.msra.mxu0 %v3078_v36  ;;  %v3355_v15 = vpop.f32.mrf.mxu1  ;;  %v1889_v4 = vadd.f32 %v3353_v39, %v377_v50 }
 0x137   :  { %2664 = vmatpush1.bf16.msra.mxu1 %v3078_v36  ;;  %2260 = vmatprep.subr.bf16.mxu0 %v3083_v7  ;;  %v3357_v53 = vpop.f32.mrf.mxu0 }
 0x138   :  { %2649 = vmatprep.subr.bf16.mxu1 %v3083_v7  ;;  %v3359_v17 = vpop.f32.mrf.mxu1  ;;  %v1940_v7 = vadd.f32 %v3355_v15, %v1889_v4 }
 0x139   :  { %v1892_v18 = vpop.f32.mrf.mxu0 }
 0x13a   :  { %2261 = vmatpush1.bf16.msra.mxu0 %v3081_v38  ;;  %v1943_v19 = vpop.f32.mrf.mxu1 }
 0x13b   :  { %2665 = vmatpush1.bf16.msra.mxu1 %v3081_v38  ;;  %2262 = vmatprep.subr.bf16.mxu0 %v3086_v9  ;;  %v1893_v21 = vpop.f32.mrf.mxu0 }
 0x13c   :  { %2650 = vmatprep.subr.bf16.mxu1 %v3086_v9  ;;  %v1944_v23 = vpop.f32.mrf.mxu1 }
 0x13d   :  { %v388_v23 = vsub.s32 3, %v3361_v37 }
 0x13e   :  { %2263 = vmatpush1.bf16.msra.mxu0 %v3084_v11 }
 0x13f   :  { %2666 = vmatpush1.bf16.msra.mxu1 %v3084_v11  ;;  %2264 = vmatprep.subr.bf16.mxu0 %v3089_v52 }
 0x140   :  { %2651 = vmatprep.subr.bf16.mxu1 %v3089_v52 }
 0x142   :  { %2265 = vmatpush1.bf16.msra.mxu0 %v3087_v16 }
 0x143   :  { %2667 = vmatpush1.bf16.msra.mxu1 %v3087_v16  ;;  %2266 = vmatprep.subr.bf16.mxu0 %v3092_v54 }
 0x144   :  { %2652 = vmatprep.subr.bf16.mxu1 %v3092_v54 }
 0x146   :  { %2267 = vmatpush1.bf16.msra.mxu0 %v3090_v20 }
 0x147   :  { %2668 = vmatpush1.bf16.msra.mxu1 %v3090_v20  ;;  %2268 = vmatprep.subr.bf16.mxu0 %v3095_v22 }
 0x148   :  { %2653 = vmatprep.subr.bf16.mxu1 %v3095_v22  ;;  %v384_v22 = vsub.s32 2, %v3361_v37 }
 0x14a   :  { %2269 = vmatpush2.bf16.msra.mxu0 %v3093_v24 }
 0x14b   :  { %2669 = vmatpush2.bf16.msra.mxu1 %v3093_v24  ;;  %2270 = vmatprep.subr.bf16.mxu0 %v3098_v25  ;;  %v385_v24 = vrot.slane %v3364_v45, %v384_v22 }
 0x14c   :  { %2654 = vmatprep.subr.bf16.mxu1 %v3098_v25  ;;  %v389_v25 = vrot.slane %v3364_v45, %v388_v23 }
 0x14e   :  { %2271 = vmatpush2.bf16.msra.mxu0 %v3096_v26 }
 0x14f   :  { %2670 = vmatpush2.bf16.msra.mxu1 %v3096_v26  ;;  %2272 = vmatprep.subr.bf16.mxu0 %v3101_v27 }
 0x150   :  { %2655 = vmatprep.subr.bf16.mxu1 %v3101_v27 }
 0x152   :  { %2273 = vmatpush2.bf16.msra.mxu0 %v3099_v28 }
 0x153   :  { %2671 = vmatpush2.bf16.msra.mxu1 %v3099_v28  ;;  %2274 = vmatprep.subr.bf16.mxu0 %v3104_v29 }
 0x154   :  { %2656 = vmatprep.subr.bf16.mxu1 %v3104_v29 }
 0x156   :  { %2275 = vmatpush2.bf16.msra.mxu0 %v3102_v30 }
 0x157   :  { %2672 = vmatpush2.bf16.msra.mxu1 %v3102_v30  ;;  %2276 = vmatprep.subr.bf16.mxu0 %v3107_v32 }
 0x158   :  { %2657 = vmatprep.subr.bf16.mxu1 %v3107_v32 }
 0x15a   :  { %2277 = vmatpush2.bf16.msra.mxu0 %v3105_v34 }
 0x15b   :  { %2673 = vmatpush2.bf16.msra.mxu1 %v3105_v34  ;;  %2278 = vmatprep.subr.bf16.mxu0 %v3110_v35 }
 0x15c   :  { %2658 = vmatprep.subr.bf16.mxu1 %v3110_v35 }
 0x15e   :  { %2279 = vmatpush2.bf16.msra.mxu0 %v3108_v40 }
 0x15f   :  { %2674 = vmatpush2.bf16.msra.mxu1 %v3108_v40  ;;  %2280 = vmatprep.subr.bf16.mxu0 %v3113_v41 }
 0x160   :  { %2659 = vmatprep.subr.bf16.mxu1 %v3113_v41 }
 0x162   :  { %2281 = vmatpush2.bf16.msra.mxu0 %v3111_v48 }
 0x163   :  { %2675 = vmatpush2.bf16.msra.mxu1 %v3111_v48  ;;  %2282 = vmatprep.subr.bf16.mxu0 %v3116_v49 }
 0x164   :  { %2660 = vmatprep.subr.bf16.mxu1 %v3116_v49 }
 0x166   :  { %2283 = vmatpush2.bf16.msra.mxu0 %v3114_v55 }
 0x167   :  { %2676 = vmatpush2.bf16.msra.mxu1 %v3114_v55 }
 0x169   :  { %v1980_v60 = vpop.f32.mrf.mxu0  ;;  %2285 = vmatmul.mubr.bf16.vlgmr.msra.gmra.mxu0 %v3307_v31  ;;  %v1891_v31 = vadd.f32 %v3357_v53, %v381_v51 }
 0x16a   :  { %v2031_v61 = vpop.f32.mrf.mxu1  ;;  %2295 = vmatmul.mubr.bf16.vlgmr.msra.gmra.mxu1 %v3315_v47  ;;  %v1981_v0 = vadd.f32 %v1980_v60, %v1930_v58 }
 0x16b   :  { %v1982_v1 = vpop.f32.mrf.mxu0  ;;  %v1942_v9 = vadd.f32 %v3359_v17, %v1891_v31  ;;  %v2032_v26 = vadd.f32 %v2031_v61, %v385_v24 }
 0x16c   :  { %v2033_v2 = vpop.f32.mrf.mxu1  ;;  %3117 = vtanh.f32 %v1981_v0  ;;  %v1983_v5 = vadd.f32 %v1982_v1, %v1932_v62 }
 0x16d   :  { %v1984_v6 = vpop.f32.mrf.mxu0  ;;  %v2034_v29 = vadd.f32 %v2033_v2, %v389_v25 }
 0x16e   :  { %v2035_v12 = vpop.f32.mrf.mxu1  ;;  %3119 = vtanh.f32 %v1983_v5  ;;  %v1985_v47 = vadd.f32 %v1984_v6, %v1934_v3 }
 0x16f   :  { %v1986_v36 = vpop.f32.mrf.mxu0  ;;  %v2036_v34 = vadd.f32 %v2035_v12, %v385_v24 }
 0x170   :  { %v2037_v43 = vpop.f32.mrf.mxu1  ;;  %3121 = vtanh.f32 %v1985_v47  ;;  %v1987_v8 = vadd.f32 %v1986_v36, %v1936_v13 }
 0x171   :  { %v1990_v38 = vpop.f32.mrf.mxu0  ;;  %v2038_v46 = vadd.f32 %v2037_v43, %v389_v25 }
 0x172   :  { %v2041_v44 = vpop.f32.mrf.mxu1  ;;  %3123 = vtanh.f32 %v1987_v8  ;;  %v1991_v10 = vadd.f32 %v1990_v38, %v1940_v7 }
 0x173   :  { %v1992_v11 = vpop.f32.mrf.mxu0  ;;  %v2042_v55 = vadd.f32 %v2041_v44, %v385_v24 }
 0x174   :  { %v2043_v52 = vpop.f32.mrf.mxu1  ;;  %3125 = vtanh.f32 %v1991_v10  ;;  %v1993_v14 = vadd.f32 %v1992_v11, %v1942_v9 }
 0x175   :  { %v1994_v39 = vpop.f32.mrf.mxu0  ;;  %v2044_v60 = vadd.f32 %v2043_v52, %v389_v25 }
 0x176   :  { %v2045_v16 = vpop.f32.mrf.mxu1  ;;  %3127 = vtanh.f32 %v1993_v14 }
 0x177   :  { %v1995_v53 = vpop.f32.mrf.mxu0 }
 0x178   :  { %v2046_v54 = vpop.f32.mrf.mxu1 }
 0x179   :  { %v3118_v18 = vpop.eup %3117 }
 0x17a   :  { %2321 = vst [vmem:[#allocation8] sm:$0xff] %v3118_v18 }
 0x17b   :  { %v3120_v15 = vpop.eup %3119 }
 0x17c   :  { %2322 = vst [vmem:[#allocation8 + $0x8] sm:$0xff] %v3120_v15 }
 0x17d   :  { %v3122_v19 = vpop.eup %3121 }
 0x17e   :  { %2327 = vst [vmem:[#allocation8 + $0x30] sm:$0xff] %v3122_v19 }
 0x17f   :  { %v3124_v20 = vpop.eup %3123 }
 0x180   :  { %2328 = vst [vmem:[#allocation8 + $0x38] sm:$0xff] %v3124_v20 }
 0x181   :  { %v3126_v17 = vpop.eup %3125 }
 0x182   :  { %2333 = vst [vmem:[#allocation8 + $0x60] sm:$0xff] %v3126_v17  ;;  %v392_v17 = vsub.s32 4, %v3361_v37 }
 0x183   :  { %v3128_v21 = vpop.eup %3127 }
 0x184   :  { %2334 = vst [vmem:[#allocation8 + $0x68] sm:$0xff] %v3128_v21  ;;  %v396_v21 = vsub.s32 5, %v3361_v37  ;;  %v393_v22 = vrot.slane %v3364_v45, %v392_v17 }
 0x186   :  { %v397_v23 = vrot.slane %v3364_v45, %v396_v21 }
 0x1a9   :  { %v2082_v27 = vpop.f32.mrf.mxu0 }
 0x1aa   :  { %v2133_v28 = vpop.f32.mrf.mxu1  ;;  %v2083_v30 = vadd.f32 %v2082_v27, %v2032_v26 }
 0x1ab   :  { %v2084_v32 = vpop.f32.mrf.mxu0 }
 0x1ac   :  { %v2135_v33 = vpop.f32.mrf.mxu1  ;;  %v2134_v35 = vadd.f32 %v2133_v28, %v2083_v30  ;;  %v2085_v40 = vadd.f32 %v2084_v32, %v2034_v29 }
 0x1ad   :  { %v2086_v41 = vpop.f32.mrf.mxu0 }
 0x1ae   :  { %v2137_v42 = vpop.f32.mrf.mxu1  ;;  %3129 = vtanh.f32 %v2134_v35  ;;  %v2136_v48 = vadd.f32 %v2135_v33, %v2085_v40  ;;  %v2087_v49 = vadd.f32 %v2086_v41, %v2036_v34 }
 0x1af   :  { %v2088_v50 = vpop.f32.mrf.mxu0 }
 0x1b0   :  { %v2139_v51 = vpop.f32.mrf.mxu1  ;;  %3131 = vtanh.f32 %v2136_v48  ;;  %v2138_v56 = vadd.f32 %v2137_v42, %v2087_v49  ;;  %v2089_v57 = vadd.f32 %v2088_v50, %v2038_v46 }
 0x1b1   :  { %v2092_v58 = vpop.f32.mrf.mxu0 }
 0x1b2   :  { %v2143_v59 = vpop.f32.mrf.mxu1  ;;  %3133 = vtanh.f32 %v2138_v56  ;;  %v2140_v61 = vadd.f32 %v2139_v51, %v2089_v57  ;;  %v2093_v62 = vadd.f32 %v2092_v58, %v2042_v55 }
 0x1b3   :  { %v2094_v63 = vpop.f32.mrf.mxu0 }
 0x1b4   :  { %v2145_v0 = vpop.f32.mrf.mxu1  ;;  %3135 = vtanh.f32 %v2140_v61  ;;  %v2095_v1 = vadd.f32 %v2094_v63, %v2044_v60  ;;  %v2144_v2 = vadd.f32 %v2143_v59, %v2093_v62 }
 0x1b5   :  { %v2096_v3 = vpop.f32.mrf.mxu0 }
 0x1b6   :  { %v2147_v4 = vpop.f32.mrf.mxu1  ;;  %3137 = vtanh.f32 %v2144_v2  ;;  %v2146_v5 = vadd.f32 %v2145_v0, %v2095_v1 }
 0x1b7   :  { %v2097_v6 = vpop.f32.mrf.mxu0 }
 0x1b8   :  { %v2148_v12 = vpop.f32.mrf.mxu1  ;;  %3139 = vtanh.f32 %v2146_v5 }
 0x1bb   :  { %v3130_v13 = vpop.eup %3129 }
 0x1bc   :  { %2323 = vst [vmem:[#allocation8 + $0x10] sm:$0xff] %v3130_v13 }
 0x1bd   :  { %v3132_v31 = vpop.eup %3131 }
 0x1be   :  { %2324 = vst [vmem:[#allocation8 + $0x18] sm:$0xff] %v3132_v31 }
 0x1bf   :  { %v3134_v47 = vpop.eup %3133 }
 0x1c0   :  { %2329 = vst [vmem:[#allocation8 + $0x40] sm:$0xff] %v3134_v47 }
 0x1c1   :  { %v3136_v36 = vpop.eup %3135 }
 0x1c2   :  { %2330 = vst [vmem:[#allocation8 + $0x48] sm:$0xff] %v3136_v36 }
 0x1c3   :  { %v3138_v43 = vpop.eup %3137 }
 0x1c4   :  { %2335 = vst [vmem:[#allocation8 + $0x70] sm:$0xff] %v3138_v43 }
 0x1c5   :  { %v3140_v7 = vpop.eup %3139 }
 0x1c6   :  { %2336 = vst [vmem:[#allocation8 + $0x78] sm:$0xff] %v3140_v7 }
 0x1e9   :  { %v2184_v8 = vpop.f32.mrf.mxu0 }
 0x1ea   :  { %v2235_v38 = vpop.f32.mrf.mxu1  ;;  %v2185_v24 = vadd.f32 %v2184_v8, %v393_v22 }
 0x1eb   :  { %v2186_v44 = vpop.f32.mrf.mxu0 }
 0x1ec   :  { %v2237_v9 = vpop.f32.mrf.mxu1  ;;  %v2187_v26 = vadd.f32 %v2186_v44, %v397_v23  ;;  %v2236_v28 = vadd.f32 %v2235_v38, %v2185_v24 }
 0x1ed   :  { %v2188_v10 = vpop.f32.mrf.mxu0 }
 0x1ee   :  { %v2239_v11 = vpop.f32.mrf.mxu1  ;;  %v2189_v29 = vadd.f32 %v2188_v10, %v393_v22  ;;  %v2238_v32 = vadd.f32 %v2237_v9, %v2187_v26 }
 0x1ef   :  { %v2190_v52 = vpop.f32.mrf.mxu0 }
 0x1f0   :  { %v2241_v14 = vpop.f32.mrf.mxu1  ;;  %v2191_v35 = vadd.f32 %v2190_v52, %v397_v23  ;;  %v2240_v48 = vadd.f32 %v2239_v11, %v2189_v29 }
 0x1f1   :  { %v2194_v39 = vpop.f32.mrf.mxu0 }
 0x1f2   :  { %v2245_v16 = vpop.f32.mrf.mxu1  ;;  %v2195_v25 = vadd.f32 %v2194_v39, %v393_v22  ;;  %v2242_v55 = vadd.f32 %v2241_v14, %v2191_v35 }
 0x1f3   :  { %v2196_v53 = vpop.f32.mrf.mxu0 }
 0x1f4   :  { %v2247_v54 = vpop.f32.mrf.mxu1  ;;  %v2197_v27 = vadd.f32 %v2196_v53, %v397_v23  ;;  %v2246_v30 = vadd.f32 %v2245_v16, %v2195_v25 }
 0x1f5   :  { %v2198_v18 = vpop.f32.mrf.mxu0 }
 0x1f6   :  { %v2249_v15 = vpop.f32.mrf.mxu1  ;;  %v2248_v40 = vadd.f32 %v2247_v54, %v2197_v27 }
 0x1f7   :  { %v2199_v19 = vpop.f32.mrf.mxu0 }
 0x1f8   :  { %v2250_v20 = vpop.f32.mrf.mxu1 }
 0x229   :  { %v2286_v33 = vpop.f32.mrf.mxu0 }
 0x22a   :  { %v2296_v34 = vpop.f32.mrf.mxu1  ;;  %v2287_v41 = vadd.f32 %v2286_v33, %v2236_v28 }
 0x22b   :  { %v2297_v42 = vadd.f32 %v2296_v34, %v2246_v30  ;;  %v2288_v46 = vpop.f32.mrf.mxu0 }
 0x22c   :  { %v2298_v37 = vpop.f32.mrf.mxu1  ;;  %3141 = vtanh.f32 %v2287_v41  ;;  %v2289_v49 = vadd.f32 %v2288_v46, %v2238_v32 }
 0x22d   :  { %v2299_v45 = vadd.f32 %v2298_v37, %v2248_v40  ;;  %3143 = vtanh.f32 %v2297_v42  ;;  %v2290_v50 = vpop.f32.mrf.mxu0 }
 0x22e   :  { %v2300_v51 = vpop.f32.mrf.mxu1  ;;  %3145 = vtanh.f32 %v2289_v49  ;;  %v2291_v56 = vadd.f32 %v2290_v50, %v2240_v48 }
 0x22f   :  { %3147 = vtanh.f32 %v2299_v45  ;;  %v2292_v57 = vpop.f32.mrf.mxu0 }
 0x230   :  { %v2301_v58 = vpop.f32.mrf.mxu1  ;;  %3149 = vtanh.f32 %v2291_v56  ;;  %v2293_v59 = vadd.f32 %v2292_v57, %v2242_v55 }
 0x232   :  { %3151 = vtanh.f32 %v2293_v59 }
 0x239   :  { %v3142_v60 = vpop.eup %3141 }
 0x23a   :  { %v3144_v61 = vpop.eup %3143  ;;  %2325 = vst [vmem:[#allocation8 + $0x20] sm:$0xff] %v3142_v60 }
 0x23b   :  { %v3146_v62 = vpop.eup %3145  ;;  %2337 = vst [vmem:[#allocation8 + $0x80] sm:$0xff] %v3144_v61 }
 0x23c   :  { %v3148_v63 = vpop.eup %3147  ;;  %2326 = vst [vmem:[#allocation8 + $0x28] sm:$0xff] %v3146_v62 }
 0x23d   :  { %v3150_v0 = vpop.eup %3149  ;;  %2338 = vst [vmem:[#allocation8 + $0x88] sm:$0xff] %v3148_v63 }
 0x23e   :  { %2331 = vst [vmem:[#allocation8 + $0x50] sm:$0xff] %v3150_v0 }
 0x23f   :  { %v3152_v1 = vpop.eup %3151 }
 0x240   :  { %2332 = vst [vmem:[#allocation8 + $0x58] sm:$0xff] %v3152_v1 }
 0x241   :  { %3224 = shalt.err (!%p3221_p5)
}
 0x242   :  { %2350 = dma.vmem_to_hbm [thread:$0]  %s2345_s2, 2304, %s3400_s3, [#allocation4], %s3243_s22, %s3243_s22, %s3244_s23  }
 0x243   :  { %3237 = dma.done.wait [#allocation4], 2304  }
 0x244   :  { %3238 = vsyncadd [#allocation4], 4294964992 }
 0x245   :  { %2354 = vsyncpa [#allocation3], 1 }
 0x246   :  { %2355 = vsyncpa [#allocation6], 1 }
 0x247   :  { %2356 = vsyncpa [#allocation4], 1 }

</bundles_post_ra>
